<compile_context>
chip_gen: v5e
topology: v5e:2x2
jax: 0.10.0
libtpu: 0.0.40
codegen_flags: <defaults>
</compile_context>

<pallas_src>
import numpy as np
import jax
import jax.numpy as jnp
from jax import lax
from jax.experimental import pallas as pl
from jax.experimental.pallas import tpu as pltpu


def _concrete_dropout_lstm_kernel(scal_ref,   # SMEM (1,4): [p_logit, p_logit_rec, 1/(1-p), 1/(1-p_rec)]
                                  x_ref,      # VMEM (T, Bb, D)   f32, time-major
                                  ux_ref,     # VMEM (Bb, D)      f32 uniform noise (input mask)
                                  uh_ref,     # VMEM (Bb, H)      f32 uniform noise (recurrent mask)
                                  wih_ref,    # VMEM (D, 4H)      bf16
                                  whh4_ref,   # VMEM (4H, 4H)     bf16, rows [3H:4H) = W_hh, rest 0
                                  bias_ref,   # VMEM (1, 4H)      f32 (= b_ih + b_hh)
                                  xout_ref,   # VMEM (T, Bb, 4H)  f32 (o-quarter lanes hold h_t)
                                  gx_ref):    # VMEM (T, Bb, 4H)  f32 scratch
    T, Bb, D = x_ref.shape
    G = whh4_ref.shape[1]          # 4H
    H = G // 4
    eps = 1e-7
    temp = 0.1

    p_logit = scal_ref[0, 0]
    p_logit_rec = scal_ref[0, 1]
    inv_retain_x = scal_ref[0, 2]
    inv_retain_h = scal_ref[0, 3]

    def keep_mask(u, logit_p):
        # 1 - sigmoid((logit(p) + logit(u)) / temp) == "random_tensor" of the reference.
        # p_logit is used directly instead of log(p+eps)-log(1-p+eps): equal up to ~eps.
        drop_logit = logit_p + jnp.log(u + eps) - jnp.log(1.0 - u + eps)
        return 1.0 - jax.nn.sigmoid(drop_logit / temp)

    # Masks (retain scaling folded in), computed ONCE per call.
    mask_x = keep_mask(ux_ref[...], p_logit) * inv_retain_x            # (Bb, D)
    mask_h = keep_mask(uh_ref[...], p_logit_rec) * inv_retain_h        # (Bb, H)
    # Recurrent mask placed in the o-quarter lanes (where h lives); other lanes
    # zeroed so junk quarters never reach the recurrent matmul.
    mask_h4 = jnp.concatenate(
        [jnp.zeros((Bb, 3 * H), jnp.float32), mask_h], axis=-1)        # (Bb, 4H)

    # Batched input projection for all timesteps: one bf16 MXU matmul, f32 accumulate.
    x_scaled = (x_ref[...] * mask_x[None, :, :]).astype(jnp.bfloat16)  # (T, Bb, D)
    gx = jnp.dot(x_scaled.reshape(T * Bb, D), wih_ref[...],
                 preferred_element_type=jnp.float32)                   # (T*Bb, 4H) f32
    gx = gx + bias_ref[...]
    gx_ref[...] = gx.reshape(T, Bb, G)

    whh4 = whh4_ref[...]                                               # bf16 (4H, 4H)

    # Lane-quarter layout of `act`: [ i | f | g | o ] (PyTorch LSTMCell order).
    # All per-step gate math is full-width (EUP activations + XLU rolls); no
    # 32-lane extractions on the serial path.
    q_idx = lax.broadcasted_iota(jnp.int32, (Bb, G), 1)
    g_sel = (q_idx >= 2 * H) & (q_idx < 3 * H)

    def step(t, carry):
        # h_vec holds the real h in the o-quarter (Q3); c_vec holds the real c
        # in the f-quarter (Q1); other quarters carry bounded junk that never
        # influences the real lanes.
        h_vec, c_vec = carry                                           # f32 (Bb, 4H)
        h_b = (h_vec * mask_h4).astype(jnp.bfloat16)                   # only Q3 nonzero
        rec = jnp.dot(h_b, whh4, preferred_element_type=jnp.float32)   # == (h*mask_h) @ W_hh
        gates = gx_ref[t] + rec                                        # (Bb, 4H) pre-activations
        act = jnp.where(g_sel, jnp.tanh(gates), jax.nn.sigmoid(gates))  # [i|f|g|o]
        ig = act * pltpu.roll(act, 2 * H, axis=1)                      # i*g at Q0 and Q2
        c_new = act * c_vec + pltpu.roll(ig, H, axis=1)                # Q1 = f*c + i*g
        h_new = act * pltpu.roll(jnp.tanh(c_new), 2 * H, axis=1)       # Q3 = o*tanh(c_new)
        xout_ref[t] = h_new                                            # lane-dense 4H-wide store
        return h_new, c_new

    zeros = jnp.zeros((Bb, G), jnp.float32)
    lax.fori_loop(0, T, step, (zeros, zeros), unroll=True)


def concrete_dropout_lstm_forward(x_btd, p_logit, p_logit_rec,
                                  w_ih, w_hh, b_ih, b_hh,
                                  u_x, u_h,
                                  weight_regularizer=1e-6,
                                  bias_regularizer=1e-6,
                                  dropout_regularizer=1e-5,
                                  batch_block=None):
    """x_btd: (B, T, D) f32.  w_ih: (D, 4H), w_hh: (H, 4H), gate order [i,f,g,o].
    Returns (x_out (B,T,H), h_final (B,H), regularization, p, p_rec)."""
    B, T, D = x_btd.shape
    H = w_hh.shape[0]
    G = 4 * H
    assert w_ih.shape == (D, G) and w_hh.shape == (H, G)

    bb = B if batch_block is None else batch_block
    assert B % bb == 0

    p = jax.nn.sigmoid(p_logit)
    p_rec = jax.nn.sigmoid(p_logit_rec)

    scal = jnp.stack([jnp.asarray(p_logit, jnp.float32).reshape(()),
                      jnp.asarray(p_logit_rec, jnp.float32).reshape(()),
                      (1.0 / (1.0 - p)).astype(jnp.float32).reshape(()),
                      (1.0 / (1.0 - p_rec)).astype(jnp.float32).reshape(())]).reshape(1, 4)

    bias = (b_ih + b_hh).reshape(1, G).astype(jnp.float32)
    x_tm = jnp.transpose(x_btd.astype(jnp.float32), (1, 0, 2))          # (T, B, D) time-major

    # bf16 weights for the MXU (f32 accumulation inside the kernel).
    wih_b = w_ih.astype(jnp.bfloat16)
    # W_hh zero-padded to (4H, 4H): only the o-quarter rows (where h lives) are nonzero,
    # so the recurrent matmul never needs a lane-extract of h.
    whh4 = jnp.zeros((G, G), jnp.float32).at[3 * H:, :].set(w_hh.astype(jnp.float32))
    whh4_b = whh4.astype(jnp.bfloat16)

    grid = (pl.cdiv(B, bb),)
    out_t = pl.pallas_call(
        _concrete_dropout_lstm_kernel,
        out_shape=jax.ShapeDtypeStruct((T, B, G), jnp.float32),
        grid=grid,
        in_specs=[
            pl.BlockSpec(memory_space=pltpu.MemorySpace.SMEM),           # scalars
            pl.BlockSpec((T, bb, D), lambda ib: (0, ib, 0)),             # x (time-major)
            pl.BlockSpec((bb, D), lambda ib: (ib, 0)),                   # input-mask noise
            pl.BlockSpec((bb, H), lambda ib: (ib, 0)),                   # recurrent-mask noise
            pl.BlockSpec((D, G), lambda ib: (0, 0)),                     # W_ih (pinned)
            pl.BlockSpec((G, G), lambda ib: (0, 0)),                     # W_hh (pinned, padded)
            pl.BlockSpec((1, G), lambda ib: (0, 0)),                     # bias (pinned)
        ],
        out_specs=pl.BlockSpec((T, bb, G), lambda ib: (0, ib, 0)),
        scratch_shapes=[pltpu.VMEM((T, bb, G), jnp.float32)],            # gx staging
        compiler_params=pltpu.CompilerParams(
            dimension_semantics=("parallel",)),                          # batch blocks independent
    )(scal, x_tm, u_x.astype(jnp.float32), u_h.astype(jnp.float32),
      wih_b, whh4_b, bias)

    # o-quarter lanes hold h_t; slice it out and go back to batch-major (B, T, H).
    x_out = jnp.transpose(out_t[:, :, 3 * H:], (1, 0, 2))
    h_final = x_out[:, -1, :]

    # Scalar regularization glue (plain XLA; matches the PyTorch formulas).
    sum_kernel = jnp.sum(w_ih.astype(jnp.float32) ** 2)
    sum_rec = jnp.sum(w_hh.astype(jnp.float32) ** 2)
    sum_bias = jnp.sum(b_ih.astype(jnp.float32) ** 2) + jnp.sum(b_hh.astype(jnp.float32) ** 2)
    weights_reg = weight_regularizer * (sum_kernel / (1.0 - p) + sum_rec / (1.0 - p_rec))
    bias_reg = bias_regularizer * sum_bias
    dr_kernel = p * jnp.log(p) + (1.0 - p) * jnp.log(1.0 - p)
    dr_rec = p_rec * jnp.log(p_rec) + (1.0 - p_rec) * jnp.log(1.0 - p_rec)
    dropout_reg = dropout_regularizer * (D * dr_kernel + H * dr_rec)
    regularization = weights_reg + bias_reg + dropout_reg

    return x_out, h_final, regularization, p, p_rec


def _reference_forward(x, p_logit, p_logit_rec, w_ih, w_hh, b_ih, b_hh, u_x, u_h):
    """Pure-JAX f32 reference mirroring the PyTorch module (masks reused across T)."""
    eps, temp = 1e-7, 0.1
    p = jax.nn.sigmoid(p_logit)
    p_rec = jax.nn.sigmoid(p_logit_rec)

    def keep(u, prob):
        d = (jnp.log(prob + eps) - jnp.log(1.0 - prob + eps)
             + jnp.log(u + eps) - jnp.log(1.0 - u + eps))
        return 1.0 - jax.nn.sigmoid(d / temp)

    B, T, D = x.shape
    H = w_hh.shape[0]
    mx = keep(u_x, p) / (1.0 - p)
    mh = keep(u_h, p_rec) / (1.0 - p_rec)
    bias = b_ih + b_hh
    h = jnp.zeros((B, H), jnp.float32)
    c = jnp.zeros((B, H), jnp.float32)
    outs = []
    for t in range(T):
        gates = (x[:, t, :] * mx) @ w_ih + (h * mh) @ w_hh + bias
        i = jax.nn.sigmoid(gates[:, 0 * H:1 * H])
        f = jax.nn.sigmoid(gates[:, 1 * H:2 * H])
        g = jnp.tanh(gates[:, 2 * H:3 * H])
        o = jax.nn.sigmoid(gates[:, 3 * H:4 * H])
        c = f * c + i * g
        h = o * jnp.tanh(c)
        outs.append(h)
    return jnp.stack(outs, axis=1), h


if __name__ == "__main__":
    # Small shapes consistent with the module: batch=2, seq=8, input=16, hidden=32.
    B, T, D, H = 2, 8, 16, 32

    key = jax.random.PRNGKey(0)
    k_x, k_wih, k_whh, k_bih, k_bhh, k_ux, k_uh = jax.random.split(key, 7)

    x = jax.random.normal(k_x, (B, T, D), dtype=jnp.float32)

    # p_logit init with init_min == init_max == 0.2 -> exactly logit(0.2).
    p_logit = jnp.float32(np.log(0.2) - np.log(1.0 - 0.2))
    p_logit_rec = jnp.float32(np.log(0.2) - np.log(1.0 - 0.2))

    # LSTMCell weights (pre-transposed layout, gate order i,f,g,o).
    w_ih = 0.1 * jax.random.normal(k_wih, (D, 4 * H), dtype=jnp.float32)
    w_hh = 0.1 * jax.random.normal(k_whh, (H, 4 * H), dtype=jnp.float32)
    b_ih = 0.1 * jax.random.normal(k_bih, (4 * H,), dtype=jnp.float32)
    b_hh = 0.1 * jax.random.normal(k_bhh, (4 * H,), dtype=jnp.float32)

    # Uniform noise standing in for torch.rand_like (sampled once, reused across
    # timesteps exactly as in the reference forward).
    u_x = jax.random.uniform(k_ux, (B, D), dtype=jnp.float32)
    u_h = jax.random.uniform(k_uh, (B, H), dtype=jnp.float32)

    x_out, h_final, reg, p, p_rec = concrete_dropout_lstm_forward(
        x, p_logit, p_logit_rec, w_ih, w_hh, b_ih, b_hh, u_x, u_h)
    jax.block_until_ready((x_out, h_final, reg))

    assert x_out.shape == (B, T, H)
    assert h_final.shape == (B, H)
    assert np.all(np.isfinite(np.asarray(x_out)))
    assert np.isfinite(np.asarray(reg))

    # Cross-check against a pure-JAX f32 reference (bf16 matmuls -> loose tolerance).
    ref_out, ref_h = _reference_forward(x, p_logit, p_logit_rec,
                                        w_ih, w_hh, b_ih, b_hh, u_x, u_h)
    max_err = float(jnp.max(jnp.abs(x_out - ref_out)))
    assert max_err < 2e-2, f"max abs error vs reference: {max_err}"
    assert float(jnp.max(jnp.abs(h_final - ref_h))) < 2e-2

    print("KERNEL_OK")
</pallas_src>

<mosaic_0001>
module attributes {stable_mosaic.version = 11 : i64} {
  func.func @_concrete_dropout_lstm_kernel(%arg0: i32, %arg1: memref<1x4xf32, #tpu.memory_space<smem>>, %arg2: memref<8x2x16xf32, #tpu.memory_space<vmem>>, %arg3: memref<2x16xf32, #tpu.memory_space<vmem>>, %arg4: memref<2x32xf32, #tpu.memory_space<vmem>>, %arg5: memref<16x128xbf16, #tpu.memory_space<vmem>>, %arg6: memref<128x128xbf16, #tpu.memory_space<vmem>>, %arg7: memref<1x128xf32, #tpu.memory_space<vmem>>, %arg8: memref<8x2x128xf32, #tpu.memory_space<vmem>>, %arg9: memref<8x2x128xf32, #tpu.memory_space<vmem>>) attributes {dimension_semantics = [#tpu.dimension_semantics<parallel>], iteration_bounds = array<i64: 1>, scalar_prefetch = 0 : i64, scratch_operands = 1 : i64, tpu.core_type = #tpu.core_type<tc>, window_params = [{transform_indices = @transform_0, window_bounds = array<i64: 1, 4>}, {transform_indices = @transform_1, window_bounds = array<i64: 8, 2, 16>}, {transform_indices = @transform_2, window_bounds = array<i64: 2, 16>}, {transform_indices = @transform_3, window_bounds = array<i64: 2, 32>}, {pipeline_mode = #tpu.pipeline_mode<synchronous>, transform_indices = @transform_4, window_bounds = array<i64: 16, 128>}, {pipeline_mode = #tpu.pipeline_mode<synchronous>, transform_indices = @transform_5, window_bounds = array<i64: 128, 128>}, {pipeline_mode = #tpu.pipeline_mode<synchronous>, transform_indices = @transform_6, window_bounds = array<i64: 1, 128>}, {transform_indices = @transform_7, window_bounds = array<i64: 8, 2, 128>}]} {
    %c0 = arith.constant 0 : index
    %c0_0 = arith.constant 0 : index
    %0 = memref.load %arg1[%c0, %c0_0] : memref<1x4xf32, #tpu.memory_space<smem>>
    %c0_1 = arith.constant 0 : index
    %c1 = arith.constant 1 : index
    %1 = memref.load %arg1[%c0_1, %c1] : memref<1x4xf32, #tpu.memory_space<smem>>
    %c0_2 = arith.constant 0 : index
    %c2 = arith.constant 2 : index
    %2 = memref.load %arg1[%c0_2, %c2] : memref<1x4xf32, #tpu.memory_space<smem>>
    %c0_3 = arith.constant 0 : index
    %c3 = arith.constant 3 : index
    %3 = memref.load %arg1[%c0_3, %c3] : memref<1x4xf32, #tpu.memory_space<smem>>
    %c0_4 = arith.constant 0 : index
    %c0_5 = arith.constant 0 : index
    %4 = vector.load %arg3[%c0_4, %c0_5] : memref<2x16xf32, #tpu.memory_space<vmem>>, vector<2x16xf32>
    %cst = arith.constant 1.000000e-07 : f32
    %5 = vector.broadcast %cst : f32 to vector<2x16xf32>
    %6 = arith.addf %4, %5 : vector<2x16xf32>
    %7 = math.log %6 : vector<2x16xf32>
    %8 = vector.broadcast %0 : f32 to vector<2x16xf32>
    %9 = arith.addf %8, %7 : vector<2x16xf32>
    %cst_6 = arith.constant 1.000000e+00 : f32
    %10 = vector.broadcast %cst_6 : f32 to vector<2x16xf32>
    %11 = arith.subf %10, %4 : vector<2x16xf32>
    %cst_7 = arith.constant 1.000000e-07 : f32
    %12 = vector.broadcast %cst_7 : f32 to vector<2x16xf32>
    %13 = arith.addf %11, %12 : vector<2x16xf32>
    %14 = math.log %13 : vector<2x16xf32>
    %15 = arith.subf %9, %14 : vector<2x16xf32>
    %cst_8 = arith.constant 1.000000e-01 : f32
    %16 = vector.broadcast %cst_8 : f32 to vector<2x16xf32>
    %17 = arith.divf %15, %16 : vector<2x16xf32>
    %18 = arith.negf %17 : vector<2x16xf32>
    %19 = math.exp %18 : vector<2x16xf32>
    %cst_9 = arith.constant 1.000000e+00 : f32
    %20 = vector.broadcast %cst_9 : f32 to vector<2x16xf32>
    %21 = arith.addf %20, %19 : vector<2x16xf32>
    %22 = arith.divf %20, %21 : vector<2x16xf32>
    %cst_10 = arith.constant 1.000000e+00 : f32
    %23 = vector.broadcast %cst_10 : f32 to vector<2x16xf32>
    %24 = arith.subf %23, %22 : vector<2x16xf32>
    %25 = vector.broadcast %2 : f32 to vector<2x16xf32>
    %26 = arith.mulf %24, %25 : vector<2x16xf32>
    %c0_11 = arith.constant 0 : index
    %c0_12 = arith.constant 0 : index
    %27 = vector.load %arg4[%c0_11, %c0_12] : memref<2x32xf32, #tpu.memory_space<vmem>>, vector<2x32xf32>
    %cst_13 = arith.constant 1.000000e-07 : f32
    %28 = vector.broadcast %cst_13 : f32 to vector<2x32xf32>
    %29 = arith.addf %27, %28 : vector<2x32xf32>
    %30 = math.log %29 : vector<2x32xf32>
    %31 = vector.broadcast %1 : f32 to vector<2x32xf32>
    %32 = arith.addf %31, %30 : vector<2x32xf32>
    %cst_14 = arith.constant 1.000000e+00 : f32
    %33 = vector.broadcast %cst_14 : f32 to vector<2x32xf32>
    %34 = arith.subf %33, %27 : vector<2x32xf32>
    %cst_15 = arith.constant 1.000000e-07 : f32
    %35 = vector.broadcast %cst_15 : f32 to vector<2x32xf32>
    %36 = arith.addf %34, %35 : vector<2x32xf32>
    %37 = math.log %36 : vector<2x32xf32>
    %38 = arith.subf %32, %37 : vector<2x32xf32>
    %cst_16 = arith.constant 1.000000e-01 : f32
    %39 = vector.broadcast %cst_16 : f32 to vector<2x32xf32>
    %40 = arith.divf %38, %39 : vector<2x32xf32>
    %41 = arith.negf %40 : vector<2x32xf32>
    %42 = math.exp %41 : vector<2x32xf32>
    %cst_17 = arith.constant 1.000000e+00 : f32
    %43 = vector.broadcast %cst_17 : f32 to vector<2x32xf32>
    %44 = arith.addf %43, %42 : vector<2x32xf32>
    %45 = arith.divf %43, %44 : vector<2x32xf32>
    %cst_18 = arith.constant 1.000000e+00 : f32
    %46 = vector.broadcast %cst_18 : f32 to vector<2x32xf32>
    %47 = arith.subf %46, %45 : vector<2x32xf32>
    %48 = vector.broadcast %3 : f32 to vector<2x32xf32>
    %49 = arith.mulf %47, %48 : vector<2x32xf32>
    %cst_19 = arith.constant 0.000000e+00 : f32
    %50 = vector.broadcast %cst_19 : f32 to vector<2x96xf32>
    %51 = tpu.concatenate %50, %49 in 1 : vector<2x96xf32>, vector<2x32xf32> -> vector<2x128xf32>
    %c0_20 = arith.constant 0 : index
    %c0_21 = arith.constant 0 : index
    %c0_22 = arith.constant 0 : index
    %52 = vector.load %arg2[%c0_20, %c0_21, %c0_22] : memref<8x2x16xf32, #tpu.memory_space<vmem>>, vector<8x2x16xf32>
    %53 = vector.shape_cast %26 : vector<2x16xf32> to vector<1x2x16xf32>
    %54 = vector.broadcast %53 : vector<1x2x16xf32> to vector<8x2x16xf32>
    %55 = arith.mulf %52, %54 : vector<8x2x16xf32>
    %56 = arith.truncf %55 : vector<8x2x16xf32> to vector<8x2x16xbf16>
    %57 = vector.shape_cast %56 : vector<8x2x16xbf16> to vector<16x16xbf16>
    %c0_23 = arith.constant 0 : index
    %c0_24 = arith.constant 0 : index
    %58 = vector.load %arg5[%c0_23, %c0_24] : memref<16x128xbf16, #tpu.memory_space<vmem>>, vector<16x128xbf16>
    %cst_25 = arith.constant dense<0.000000e+00> : vector<16x128xf32>
    %59 = tpu.matmul %57, %58, %cst_25 {dimension_numbers = #tpu.dot_dimension_numbers<[1], [0], [0], [1], [0, 0, 1, 1], [], []>} : vector<16x16xbf16>, vector<16x128xbf16>, vector<16x128xf32> -> vector<16x128xf32>
    %c0_26 = arith.constant 0 : index
    %c0_27 = arith.constant 0 : index
    %60 = vector.load %arg7[%c0_26, %c0_27] : memref<1x128xf32, #tpu.memory_space<vmem>>, vector<1x128xf32>
    %61 = vector.broadcast %60 : vector<1x128xf32> to vector<16x128xf32>
    %62 = arith.addf %59, %61 : vector<16x128xf32>
    %63 = vector.shape_cast %62 : vector<16x128xf32> to vector<8x2x128xf32>
    %c0_28 = arith.constant 0 : index
    %c0_29 = arith.constant 0 : index
    %c0_30 = arith.constant 0 : index
    %64 = vector.load %arg9[%c0_28, %c0_29, %c0_30] : memref<8x2x128xf32, #tpu.memory_space<vmem>>, vector<8x2x128xf32>
    tpu.vector_store %arg9[%c0_28, %c0_29, %c0_30], %63 {strides = array<i32>} : memref<8x2x128xf32, #tpu.memory_space<vmem>>, vector<8x2x128xf32>,
    %c0_31 = arith.constant 0 : index
    %c0_32 = arith.constant 0 : index
    %65 = vector.load %arg6[%c0_31, %c0_32] : memref<128x128xbf16, #tpu.memory_space<vmem>>, vector<128x128xbf16>
    %66 = tpu.iota {dimensions = array<i32: 1>} : vector<2x128xi32>
    %c64_i32 = arith.constant 64 : i32
    %67 = vector.broadcast %c64_i32 : i32 to vector<2x128xi32>
    %68 = arith.cmpi sge, %66, %67 : vector<2x128xi32>
    %c96_i32 = arith.constant 96 : i32
    %69 = vector.broadcast %c96_i32 : i32 to vector<2x128xi32>
    %70 = arith.cmpi slt, %66, %69 : vector<2x128xi32>
    %71 = arith.andi %68, %70 : vector<2x128xi1>
    %cst_33 = arith.constant 0.000000e+00 : f32
    %72 = vector.broadcast %cst_33 : f32 to vector<2x128xf32>
    %c0_i32 = arith.constant 0 : i32
    %73 = arith.mulf %72, %51 : vector<2x128xf32>
    %74 = arith.truncf %73 : vector<2x128xf32> to vector<2x128xbf16>
    %cst_34 = arith.constant dense<0.000000e+00> : vector<2x128xf32>
    %75 = tpu.matmul %74, %65, %cst_34 {dimension_numbers = #tpu.dot_dimension_numbers<[1], [0], [0], [1], [0, 0, 1, 1], [], []>} : vector<2x128xbf16>, vector<128x128xbf16>, vector<2x128xf32> -> vector<2x128xf32>
    %76 = arith.index_cast %c0_i32 : i32 to index
    %c0_35 = arith.constant 0 : index
    %c0_36 = arith.constant 0 : index
    %77 = vector.load %arg9[%76, %c0_35, %c0_36] : memref<8x2x128xf32, #tpu.memory_space<vmem>>, vector<1x2x128xf32>
    %78 = vector.shape_cast %77 : vector<1x2x128xf32> to vector<2x128xf32>
    %79 = arith.addf %78, %75 : vector<2x128xf32>
    %80 = math.tanh %79 : vector<2x128xf32>
    %81 = arith.negf %79 : vector<2x128xf32>
    %82 = math.exp %81 : vector<2x128xf32>
    %cst_37 = arith.constant 1.000000e+00 : f32
    %83 = vector.broadcast %cst_37 : f32 to vector<2x128xf32>
    %84 = arith.addf %83, %82 : vector<2x128xf32>
    %85 = arith.divf %83, %84 : vector<2x128xf32>
    %86 = arith.select %71, %80, %85 : vector<2x128xi1>, vector<2x128xf32>
    %c64_i32_38 = arith.constant 64 : i32
    %87 = tpu.dynamic_rotate %86 by %c64_i32_38 dim 1 : vector<2x128xf32>, i32 -> vector<2x128xf32>
    %88 = arith.mulf %86, %87 : vector<2x128xf32>
    %89 = arith.mulf %86, %72 : vector<2x128xf32>
    %c32_i32 = arith.constant 32 : i32
    %90 = tpu.dynamic_rotate %88 by %c32_i32 dim 1 : vector<2x128xf32>, i32 -> vector<2x128xf32>
    %91 = arith.addf %89, %90 : vector<2x128xf32>
    %92 = math.tanh %91 : vector<2x128xf32>
    %c64_i32_39 = arith.constant 64 : i32
    %93 = tpu.dynamic_rotate %92 by %c64_i32_39 dim 1 : vector<2x128xf32>, i32 -> vector<2x128xf32>
    %94 = arith.mulf %86, %93 : vector<2x128xf32>
    %95 = arith.index_cast %c0_i32 : i32 to index
    %c0_40 = arith.constant 0 : index
    %c0_41 = arith.constant 0 : index
    %96 = vector.load %arg8[%95, %c0_40, %c0_41] : memref<8x2x128xf32, #tpu.memory_space<vmem>>, vector<1x2x128xf32>
    %97 = vector.shape_cast %96 : vector<1x2x128xf32> to vector<2x128xf32>
    %98 = vector.shape_cast %94 : vector<2x128xf32> to vector<1x2x128xf32>
    tpu.vector_store %arg8[%95, %c0_40, %c0_41], %98 {strides = array<i32>} : memref<8x2x128xf32, #tpu.memory_space<vmem>>, vector<1x2x128xf32>,
    %c1_i32 = arith.constant 1 : i32
    %99 = arith.mulf %94, %51 : vector<2x128xf32>
    %100 = arith.truncf %99 : vector<2x128xf32> to vector<2x128xbf16>
    %cst_42 = arith.constant dense<0.000000e+00> : vector<2x128xf32>
    %101 = tpu.matmul %100, %65, %cst_42 {dimension_numbers = #tpu.dot_dimension_numbers<[1], [0], [0], [1], [0, 0, 1, 1], [], []>} : vector<2x128xbf16>, vector<128x128xbf16>, vector<2x128xf32> -> vector<2x128xf32>
    %102 = arith.index_cast %c1_i32 : i32 to index
    %c0_43 = arith.constant 0 : index
    %c0_44 = arith.constant 0 : index
    %103 = vector.load %arg9[%102, %c0_43, %c0_44] : memref<8x2x128xf32, #tpu.memory_space<vmem>>, vector<1x2x128xf32>
    %104 = vector.shape_cast %103 : vector<1x2x128xf32> to vector<2x128xf32>
    %105 = arith.addf %104, %101 : vector<2x128xf32>
    %106 = math.tanh %105 : vector<2x128xf32>
    %107 = arith.negf %105 : vector<2x128xf32>
    %108 = math.exp %107 : vector<2x128xf32>
    %cst_45 = arith.constant 1.000000e+00 : f32
    %109 = vector.broadcast %cst_45 : f32 to vector<2x128xf32>
    %110 = arith.addf %109, %108 : vector<2x128xf32>
    %111 = arith.divf %109, %110 : vector<2x128xf32>
    %112 = arith.select %71, %106, %111 : vector<2x128xi1>, vector<2x128xf32>
    %c64_i32_46 = arith.constant 64 : i32
    %113 = tpu.dynamic_rotate %112 by %c64_i32_46 dim 1 : vector<2x128xf32>, i32 -> vector<2x128xf32>
    %114 = arith.mulf %112, %113 : vector<2x128xf32>
    %115 = arith.mulf %112, %91 : vector<2x128xf32>
    %c32_i32_47 = arith.constant 32 : i32
    %116 = tpu.dynamic_rotate %114 by %c32_i32_47 dim 1 : vector<2x128xf32>, i32 -> vector<2x128xf32>
    %117 = arith.addf %115, %116 : vector<2x128xf32>
    %118 = math.tanh %117 : vector<2x128xf32>
    %c64_i32_48 = arith.constant 64 : i32
    %119 = tpu.dynamic_rotate %118 by %c64_i32_48 dim 1 : vector<2x128xf32>, i32 -> vector<2x128xf32>
    %120 = arith.mulf %112, %119 : vector<2x128xf32>
    %121 = arith.index_cast %c1_i32 : i32 to index
    %c0_49 = arith.constant 0 : index
    %c0_50 = arith.constant 0 : index
    %122 = vector.load %arg8[%121, %c0_49, %c0_50] : memref<8x2x128xf32, #tpu.memory_space<vmem>>, vector<1x2x128xf32>
    %123 = vector.shape_cast %122 : vector<1x2x128xf32> to vector<2x128xf32>
    %124 = vector.shape_cast %120 : vector<2x128xf32> to vector<1x2x128xf32>
    tpu.vector_store %arg8[%121, %c0_49, %c0_50], %124 {strides = array<i32>} : memref<8x2x128xf32, #tpu.memory_space<vmem>>, vector<1x2x128xf32>,
    %c2_i32 = arith.constant 2 : i32
    %125 = arith.mulf %120, %51 : vector<2x128xf32>
    %126 = arith.truncf %125 : vector<2x128xf32> to vector<2x128xbf16>
    %cst_51 = arith.constant dense<0.000000e+00> : vector<2x128xf32>
    %127 = tpu.matmul %126, %65, %cst_51 {dimension_numbers = #tpu.dot_dimension_numbers<[1], [0], [0], [1], [0, 0, 1, 1], [], []>} : vector<2x128xbf16>, vector<128x128xbf16>, vector<2x128xf32> -> vector<2x128xf32>
    %128 = arith.index_cast %c2_i32 : i32 to index
    %c0_52 = arith.constant 0 : index
    %c0_53 = arith.constant 0 : index
    %129 = vector.load %arg9[%128, %c0_52, %c0_53] : memref<8x2x128xf32, #tpu.memory_space<vmem>>, vector<1x2x128xf32>
    %130 = vector.shape_cast %129 : vector<1x2x128xf32> to vector<2x128xf32>
    %131 = arith.addf %130, %127 : vector<2x128xf32>
    %132 = math.tanh %131 : vector<2x128xf32>
    %133 = arith.negf %131 : vector<2x128xf32>
    %134 = math.exp %133 : vector<2x128xf32>
    %cst_54 = arith.constant 1.000000e+00 : f32
    %135 = vector.broadcast %cst_54 : f32 to vector<2x128xf32>
    %136 = arith.addf %135, %134 : vector<2x128xf32>
    %137 = arith.divf %135, %136 : vector<2x128xf32>
    %138 = arith.select %71, %132, %137 : vector<2x128xi1>, vector<2x128xf32>
    %c64_i32_55 = arith.constant 64 : i32
    %139 = tpu.dynamic_rotate %138 by %c64_i32_55 dim 1 : vector<2x128xf32>, i32 -> vector<2x128xf32>
    %140 = arith.mulf %138, %139 : vector<2x128xf32>
    %141 = arith.mulf %138, %117 : vector<2x128xf32>
    %c32_i32_56 = arith.constant 32 : i32
    %142 = tpu.dynamic_rotate %140 by %c32_i32_56 dim 1 : vector<2x128xf32>, i32 -> vector<2x128xf32>
    %143 = arith.addf %141, %142 : vector<2x128xf32>
    %144 = math.tanh %143 : vector<2x128xf32>
    %c64_i32_57 = arith.constant 64 : i32
    %145 = tpu.dynamic_rotate %144 by %c64_i32_57 dim 1 : vector<2x128xf32>, i32 -> vector<2x128xf32>
    %146 = arith.mulf %138, %145 : vector<2x128xf32>
    %147 = arith.index_cast %c2_i32 : i32 to index
    %c0_58 = arith.constant 0 : index
    %c0_59 = arith.constant 0 : index
    %148 = vector.load %arg8[%147, %c0_58, %c0_59] : memref<8x2x128xf32, #tpu.memory_space<vmem>>, vector<1x2x128xf32>
    %149 = vector.shape_cast %148 : vector<1x2x128xf32> to vector<2x128xf32>
    %150 = vector.shape_cast %146 : vector<2x128xf32> to vector<1x2x128xf32>
    tpu.vector_store %arg8[%147, %c0_58, %c0_59], %150 {strides = array<i32>} : memref<8x2x128xf32, #tpu.memory_space<vmem>>, vector<1x2x128xf32>,
    %c3_i32 = arith.constant 3 : i32
    %151 = arith.mulf %146, %51 : vector<2x128xf32>
    %152 = arith.truncf %151 : vector<2x128xf32> to vector<2x128xbf16>
    %cst_60 = arith.constant dense<0.000000e+00> : vector<2x128xf32>
    %153 = tpu.matmul %152, %65, %cst_60 {dimension_numbers = #tpu.dot_dimension_numbers<[1], [0], [0], [1], [0, 0, 1, 1], [], []>} : vector<2x128xbf16>, vector<128x128xbf16>, vector<2x128xf32> -> vector<2x128xf32>
    %154 = arith.index_cast %c3_i32 : i32 to index
    %c0_61 = arith.constant 0 : index
    %c0_62 = arith.constant 0 : index
    %155 = vector.load %arg9[%154, %c0_61, %c0_62] : memref<8x2x128xf32, #tpu.memory_space<vmem>>, vector<1x2x128xf32>
    %156 = vector.shape_cast %155 : vector<1x2x128xf32> to vector<2x128xf32>
    %157 = arith.addf %156, %153 : vector<2x128xf32>
    %158 = math.tanh %157 : vector<2x128xf32>
    %159 = arith.negf %157 : vector<2x128xf32>
    %160 = math.exp %159 : vector<2x128xf32>
    %cst_63 = arith.constant 1.000000e+00 : f32
    %161 = vector.broadcast %cst_63 : f32 to vector<2x128xf32>
    %162 = arith.addf %161, %160 : vector<2x128xf32>
    %163 = arith.divf %161, %162 : vector<2x128xf32>
    %164 = arith.select %71, %158, %163 : vector<2x128xi1>, vector<2x128xf32>
    %c64_i32_64 = arith.constant 64 : i32
    %165 = tpu.dynamic_rotate %164 by %c64_i32_64 dim 1 : vector<2x128xf32>, i32 -> vector<2x128xf32>
    %166 = arith.mulf %164, %165 : vector<2x128xf32>
    %167 = arith.mulf %164, %143 : vector<2x128xf32>
    %c32_i32_65 = arith.constant 32 : i32
    %168 = tpu.dynamic_rotate %166 by %c32_i32_65 dim 1 : vector<2x128xf32>, i32 -> vector<2x128xf32>
    %169 = arith.addf %167, %168 : vector<2x128xf32>
    %170 = math.tanh %169 : vector<2x128xf32>
    %c64_i32_66 = arith.constant 64 : i32
    %171 = tpu.dynamic_rotate %170 by %c64_i32_66 dim 1 : vector<2x128xf32>, i32 -> vector<2x128xf32>
    %172 = arith.mulf %164, %171 : vector<2x128xf32>
    %173 = arith.index_cast %c3_i32 : i32 to index
    %c0_67 = arith.constant 0 : index
    %c0_68 = arith.constant 0 : index
    %174 = vector.load %arg8[%173, %c0_67, %c0_68] : memref<8x2x128xf32, #tpu.memory_space<vmem>>, vector<1x2x128xf32>
    %175 = vector.shape_cast %174 : vector<1x2x128xf32> to vector<2x128xf32>
    %176 = vector.shape_cast %172 : vector<2x128xf32> to vector<1x2x128xf32>
    tpu.vector_store %arg8[%173, %c0_67, %c0_68], %176 {strides = array<i32>} : memref<8x2x128xf32, #tpu.memory_space<vmem>>, vector<1x2x128xf32>,
    %c4_i32 = arith.constant 4 : i32
    %177 = arith.mulf %172, %51 : vector<2x128xf32>
    %178 = arith.truncf %177 : vector<2x128xf32> to vector<2x128xbf16>
    %cst_69 = arith.constant dense<0.000000e+00> : vector<2x128xf32>
    %179 = tpu.matmul %178, %65, %cst_69 {dimension_numbers = #tpu.dot_dimension_numbers<[1], [0], [0], [1], [0, 0, 1, 1], [], []>} : vector<2x128xbf16>, vector<128x128xbf16>, vector<2x128xf32> -> vector<2x128xf32>
    %180 = arith.index_cast %c4_i32 : i32 to index
    %c0_70 = arith.constant 0 : index
    %c0_71 = arith.constant 0 : index
    %181 = vector.load %arg9[%180, %c0_70, %c0_71] : memref<8x2x128xf32, #tpu.memory_space<vmem>>, vector<1x2x128xf32>
    %182 = vector.shape_cast %181 : vector<1x2x128xf32> to vector<2x128xf32>
    %183 = arith.addf %182, %179 : vector<2x128xf32>
    %184 = math.tanh %183 : vector<2x128xf32>
    %185 = arith.negf %183 : vector<2x128xf32>
    %186 = math.exp %185 : vector<2x128xf32>
    %cst_72 = arith.constant 1.000000e+00 : f32
    %187 = vector.broadcast %cst_72 : f32 to vector<2x128xf32>
    %188 = arith.addf %187, %186 : vector<2x128xf32>
    %189 = arith.divf %187, %188 : vector<2x128xf32>
    %190 = arith.select %71, %184, %189 : vector<2x128xi1>, vector<2x128xf32>
    %c64_i32_73 = arith.constant 64 : i32
    %191 = tpu.dynamic_rotate %190 by %c64_i32_73 dim 1 : vector<2x128xf32>, i32 -> vector<2x128xf32>
    %192 = arith.mulf %190, %191 : vector<2x128xf32>
    %193 = arith.mulf %190, %169 : vector<2x128xf32>
    %c32_i32_74 = arith.constant 32 : i32
    %194 = tpu.dynamic_rotate %192 by %c32_i32_74 dim 1 : vector<2x128xf32>, i32 -> vector<2x128xf32>
    %195 = arith.addf %193, %194 : vector<2x128xf32>
    %196 = math.tanh %195 : vector<2x128xf32>
    %c64_i32_75 = arith.constant 64 : i32
    %197 = tpu.dynamic_rotate %196 by %c64_i32_75 dim 1 : vector<2x128xf32>, i32 -> vector<2x128xf32>
    %198 = arith.mulf %190, %197 : vector<2x128xf32>
    %199 = arith.index_cast %c4_i32 : i32 to index
    %c0_76 = arith.constant 0 : index
    %c0_77 = arith.constant 0 : index
    %200 = vector.load %arg8[%199, %c0_76, %c0_77] : memref<8x2x128xf32, #tpu.memory_space<vmem>>, vector<1x2x128xf32>
    %201 = vector.shape_cast %200 : vector<1x2x128xf32> to vector<2x128xf32>
    %202 = vector.shape_cast %198 : vector<2x128xf32> to vector<1x2x128xf32>
    tpu.vector_store %arg8[%199, %c0_76, %c0_77], %202 {strides = array<i32>} : memref<8x2x128xf32, #tpu.memory_space<vmem>>, vector<1x2x128xf32>,
    %c5_i32 = arith.constant 5 : i32
    %203 = arith.mulf %198, %51 : vector<2x128xf32>
    %204 = arith.truncf %203 : vector<2x128xf32> to vector<2x128xbf16>
    %cst_78 = arith.constant dense<0.000000e+00> : vector<2x128xf32>
    %205 = tpu.matmul %204, %65, %cst_78 {dimension_numbers = #tpu.dot_dimension_numbers<[1], [0], [0], [1], [0, 0, 1, 1], [], []>} : vector<2x128xbf16>, vector<128x128xbf16>, vector<2x128xf32> -> vector<2x128xf32>
    %206 = arith.index_cast %c5_i32 : i32 to index
    %c0_79 = arith.constant 0 : index
    %c0_80 = arith.constant 0 : index
    %207 = vector.load %arg9[%206, %c0_79, %c0_80] : memref<8x2x128xf32, #tpu.memory_space<vmem>>, vector<1x2x128xf32>
    %208 = vector.shape_cast %207 : vector<1x2x128xf32> to vector<2x128xf32>
    %209 = arith.addf %208, %205 : vector<2x128xf32>
    %210 = math.tanh %209 : vector<2x128xf32>
    %211 = arith.negf %209 : vector<2x128xf32>
    %212 = math.exp %211 : vector<2x128xf32>
    %cst_81 = arith.constant 1.000000e+00 : f32
    %213 = vector.broadcast %cst_81 : f32 to vector<2x128xf32>
    %214 = arith.addf %213, %212 : vector<2x128xf32>
    %215 = arith.divf %213, %214 : vector<2x128xf32>
    %216 = arith.select %71, %210, %215 : vector<2x128xi1>, vector<2x128xf32>
    %c64_i32_82 = arith.constant 64 : i32
    %217 = tpu.dynamic_rotate %216 by %c64_i32_82 dim 1 : vector<2x128xf32>, i32 -> vector<2x128xf32>
    %218 = arith.mulf %216, %217 : vector<2x128xf32>
    %219 = arith.mulf %216, %195 : vector<2x128xf32>
    %c32_i32_83 = arith.constant 32 : i32
    %220 = tpu.dynamic_rotate %218 by %c32_i32_83 dim 1 : vector<2x128xf32>, i32 -> vector<2x128xf32>
    %221 = arith.addf %219, %220 : vector<2x128xf32>
    %222 = math.tanh %221 : vector<2x128xf32>
    %c64_i32_84 = arith.constant 64 : i32
    %223 = tpu.dynamic_rotate %222 by %c64_i32_84 dim 1 : vector<2x128xf32>, i32 -> vector<2x128xf32>
    %224 = arith.mulf %216, %223 : vector<2x128xf32>
    %225 = arith.index_cast %c5_i32 : i32 to index
    %c0_85 = arith.constant 0 : index
    %c0_86 = arith.constant 0 : index
    %226 = vector.load %arg8[%225, %c0_85, %c0_86] : memref<8x2x128xf32, #tpu.memory_space<vmem>>, vector<1x2x128xf32>
    %227 = vector.shape_cast %226 : vector<1x2x128xf32> to vector<2x128xf32>
    %228 = vector.shape_cast %224 : vector<2x128xf32> to vector<1x2x128xf32>
    tpu.vector_store %arg8[%225, %c0_85, %c0_86], %228 {strides = array<i32>} : memref<8x2x128xf32, #tpu.memory_space<vmem>>, vector<1x2x128xf32>,
    %c6_i32 = arith.constant 6 : i32
    %229 = arith.mulf %224, %51 : vector<2x128xf32>
    %230 = arith.truncf %229 : vector<2x128xf32> to vector<2x128xbf16>
    %cst_87 = arith.constant dense<0.000000e+00> : vector<2x128xf32>
    %231 = tpu.matmul %230, %65, %cst_87 {dimension_numbers = #tpu.dot_dimension_numbers<[1], [0], [0], [1], [0, 0, 1, 1], [], []>} : vector<2x128xbf16>, vector<128x128xbf16>, vector<2x128xf32> -> vector<2x128xf32>
    %232 = arith.index_cast %c6_i32 : i32 to index
    %c0_88 = arith.constant 0 : index
    %c0_89 = arith.constant 0 : index
    %233 = vector.load %arg9[%232, %c0_88, %c0_89] : memref<8x2x128xf32, #tpu.memory_space<vmem>>, vector<1x2x128xf32>
    %234 = vector.shape_cast %233 : vector<1x2x128xf32> to vector<2x128xf32>
    %235 = arith.addf %234, %231 : vector<2x128xf32>
    %236 = math.tanh %235 : vector<2x128xf32>
    %237 = arith.negf %235 : vector<2x128xf32>
    %238 = math.exp %237 : vector<2x128xf32>
    %cst_90 = arith.constant 1.000000e+00 : f32
    %239 = vector.broadcast %cst_90 : f32 to vector<2x128xf32>
    %240 = arith.addf %239, %238 : vector<2x128xf32>
    %241 = arith.divf %239, %240 : vector<2x128xf32>
    %242 = arith.select %71, %236, %241 : vector<2x128xi1>, vector<2x128xf32>
    %c64_i32_91 = arith.constant 64 : i32
    %243 = tpu.dynamic_rotate %242 by %c64_i32_91 dim 1 : vector<2x128xf32>, i32 -> vector<2x128xf32>
    %244 = arith.mulf %242, %243 : vector<2x128xf32>
    %245 = arith.mulf %242, %221 : vector<2x128xf32>
    %c32_i32_92 = arith.constant 32 : i32
    %246 = tpu.dynamic_rotate %244 by %c32_i32_92 dim 1 : vector<2x128xf32>, i32 -> vector<2x128xf32>
    %247 = arith.addf %245, %246 : vector<2x128xf32>
    %248 = math.tanh %247 : vector<2x128xf32>
    %c64_i32_93 = arith.constant 64 : i32
    %249 = tpu.dynamic_rotate %248 by %c64_i32_93 dim 1 : vector<2x128xf32>, i32 -> vector<2x128xf32>
    %250 = arith.mulf %242, %249 : vector<2x128xf32>
    %251 = arith.index_cast %c6_i32 : i32 to index
    %c0_94 = arith.constant 0 : index
    %c0_95 = arith.constant 0 : index
    %252 = vector.load %arg8[%251, %c0_94, %c0_95] : memref<8x2x128xf32, #tpu.memory_space<vmem>>, vector<1x2x128xf32>
    %253 = vector.shape_cast %252 : vector<1x2x128xf32> to vector<2x128xf32>
    %254 = vector.shape_cast %250 : vector<2x128xf32> to vector<1x2x128xf32>
    tpu.vector_store %arg8[%251, %c0_94, %c0_95], %254 {strides = array<i32>} : memref<8x2x128xf32, #tpu.memory_space<vmem>>, vector<1x2x128xf32>,
    %c7_i32 = arith.constant 7 : i32
    %255 = arith.mulf %250, %51 : vector<2x128xf32>
    %256 = arith.truncf %255 : vector<2x128xf32> to vector<2x128xbf16>
    %cst_96 = arith.constant dense<0.000000e+00> : vector<2x128xf32>
    %257 = tpu.matmul %256, %65, %cst_96 {dimension_numbers = #tpu.dot_dimension_numbers<[1], [0], [0], [1], [0, 0, 1, 1], [], []>} : vector<2x128xbf16>, vector<128x128xbf16>, vector<2x128xf32> -> vector<2x128xf32>
    %258 = arith.index_cast %c7_i32 : i32 to index
    %c0_97 = arith.constant 0 : index
    %c0_98 = arith.constant 0 : index
    %259 = vector.load %arg9[%258, %c0_97, %c0_98] : memref<8x2x128xf32, #tpu.memory_space<vmem>>, vector<1x2x128xf32>
    %260 = vector.shape_cast %259 : vector<1x2x128xf32> to vector<2x128xf32>
    %261 = arith.addf %260, %257 : vector<2x128xf32>
    %262 = math.tanh %261 : vector<2x128xf32>
    %263 = arith.negf %261 : vector<2x128xf32>
    %264 = math.exp %263 : vector<2x128xf32>
    %cst_99 = arith.constant 1.000000e+00 : f32
    %265 = vector.broadcast %cst_99 : f32 to vector<2x128xf32>
    %266 = arith.addf %265, %264 : vector<2x128xf32>
    %267 = arith.divf %265, %266 : vector<2x128xf32>
    %268 = arith.select %71, %262, %267 : vector<2x128xi1>, vector<2x128xf32>
    %c64_i32_100 = arith.constant 64 : i32
    %269 = tpu.dynamic_rotate %268 by %c64_i32_100 dim 1 : vector<2x128xf32>, i32 -> vector<2x128xf32>
    %270 = arith.mulf %268, %269 : vector<2x128xf32>
    %271 = arith.mulf %268, %247 : vector<2x128xf32>
    %c32_i32_101 = arith.constant 32 : i32
    %272 = tpu.dynamic_rotate %270 by %c32_i32_101 dim 1 : vector<2x128xf32>, i32 -> vector<2x128xf32>
    %273 = arith.addf %271, %272 : vector<2x128xf32>
    %274 = math.tanh %273 : vector<2x128xf32>
    %c64_i32_102 = arith.constant 64 : i32
    %275 = tpu.dynamic_rotate %274 by %c64_i32_102 dim 1 : vector<2x128xf32>, i32 -> vector<2x128xf32>
    %276 = arith.mulf %268, %275 : vector<2x128xf32>
    %277 = arith.index_cast %c7_i32 : i32 to index
    %c0_103 = arith.constant 0 : index
    %c0_104 = arith.constant 0 : index
    %278 = vector.load %arg8[%277, %c0_103, %c0_104] : memref<8x2x128xf32, #tpu.memory_space<vmem>>, vector<1x2x128xf32>
    %279 = vector.shape_cast %278 : vector<1x2x128xf32> to vector<2x128xf32>
    %280 = vector.shape_cast %276 : vector<2x128xf32> to vector<1x2x128xf32>
    tpu.vector_store %arg8[%277, %c0_103, %c0_104], %280 {strides = array<i32>} : memref<8x2x128xf32, #tpu.memory_space<vmem>>, vector<1x2x128xf32>,
    %c8_i32 = arith.constant 8 : i32
    return
  }
  func.func @transform_0(%arg0: i32) -> (i32, i32) {
    %c0_i32 = arith.constant 0 : i32
    %c0_i32_0 = arith.constant 0 : i32
    %c0_i32_1 = arith.constant 0 : i32
    return %c0_i32, %c0_i32_0 : i32, i32
  }
  func.func @transform_1(%arg0: i32) -> (i32, i32, i32) {
    %c0_i32 = arith.constant 0 : i32
    %c0_i32_0 = arith.constant 0 : i32
    %c0_i32_1 = arith.constant 0 : i32
    return %c0_i32, %arg0, %c0_i32_0 : i32, i32, i32
  }
  func.func @transform_2(%arg0: i32) -> (i32, i32) {
    %c0_i32 = arith.constant 0 : i32
    %c0_i32_0 = arith.constant 0 : i32
    return %arg0, %c0_i32 : i32, i32
  }
  func.func @transform_3(%arg0: i32) -> (i32, i32) {
    %c0_i32 = arith.constant 0 : i32
    %c0_i32_0 = arith.constant 0 : i32
    return %arg0, %c0_i32 : i32, i32
  }
  func.func @transform_4(%arg0: i32) -> (i32, i32) {
    %c0_i32 = arith.constant 0 : i32
    %c0_i32_0 = arith.constant 0 : i32
    %c0_i32_1 = arith.constant 0 : i32
    return %c0_i32, %c0_i32_0 : i32, i32
  }
  func.func @transform_5(%arg0: i32) -> (i32, i32) {
    %c0_i32 = arith.constant 0 : i32
    %c0_i32_0 = arith.constant 0 : i32
    %c0_i32_1 = arith.constant 0 : i32
    return %c0_i32, %c0_i32_0 : i32, i32
  }
  func.func @transform_6(%arg0: i32) -> (i32, i32) {
    %c0_i32 = arith.constant 0 : i32
    %c0_i32_0 = arith.constant 0 : i32
    %c0_i32_1 = arith.constant 0 : i32
    return %c0_i32, %c0_i32_0 : i32, i32
  }
  func.func @transform_7(%arg0: i32) -> (i32, i32, i32) {
    %c0_i32 = arith.constant 0 : i32
    %c0_i32_0 = arith.constant 0 : i32
    %c0_i32_1 = arith.constant 0 : i32
    return %c0_i32, %arg0, %c0_i32_0 : i32, i32, i32
  }
}

</mosaic_0001>

<bundles_post_ra>
// kernel: tpu_custom_call.1
= control target key start
LH: loop header
LB: loop body
LE: loop exit
PB: predicated region body
PF: predicated region fallthrough
CT: control target
= control target key end

     0   :  { %12 = vsyncpa [#allocation6], 0  ;;  %s1304_s0 = inlined_call_operand.hbm [shape: f32[1,4], index: 0, kind: input, shape index: {}]   ;;  %s1305_s1 = inlined_call_operand.hbm [shape: f32[8,2,16], index: 1, kind: input, shape index: {}]   ;;  %s1306_s2 = inlined_call_operand.hbm [shape: f32[2,16], index: 2, kind: input, shape index: {}]   ;;  %s1307_s3 = inlined_call_operand.vmem [shape: f32[2,32], index: 3, kind: input, shape index: {}]   ;;  %s1308_s4 = inlined_call_operand.hbm [shape: bf16[16,128], index: 4, kind: input, shape index: {}]   ;;  %s1309_s5 = inlined_call_operand.hbm [shape: bf16[128,128], index: 5, kind: input, shape index: {}]   ;;  %s1310_s6 = inlined_call_operand.vmem [shape: f32[1,128], index: 6, kind: input, shape index: {}]   ;;  %s1311_s7 = inlined_call_operand.hbm [shape: f32[8,2,128], index: 7, kind: output, shape index: {}]  }
   0x1   :  { %13 = vsyncpa [#allocation4], 0 }
   0x2   :  { %14 = vsyncpa [#allocation9], 0 }
   0x3   :  { %15 = vsyncpa [#allocation12], 0  ;;  %s44_s26 = sshll.u32 %s1306_s2, 4  ;;  %s45_s26 = int_to_ptr.hbm [resolvable:$true] %s44_s26 }
   0x4   :  { %16 = vsyncpa [#allocation5], 0  ;;  %s1087_s27 = smov [#allocation8]   ;;  %s22_s8 = sshll.u32 %s1304_s0, 4  ;;  %s23_s8 = int_to_ptr.hbm [resolvable:$true] %s22_s8 }
   0x5   :  { %s46_s28 = sshll.u32 %s1087_s27, 4  ;;  %s1088_s9 = smov [#allocation3]   ;;  %s47_s28 = int_to_ptr.vmem [resolvable:$true] %s46_s28 }
   0x6   :  { %49 = dma.hbm_to_vmem [thread:$0]  %s45_s26, 32, %s47_s28, [#allocation9]  }
   0x7   :  { %25 = dma.hbm_to_smem %s23_s8, 16, %s1088_s9, [#allocation6]  }
   0x8   :  { %s30_s12 = sshll.u32 %s1305_s1, 4  ;;  %s1089_s13 = smov [#allocation7]   ;;  %s31_s12 = int_to_ptr.hbm [resolvable:$true] %s30_s12 }
   0x9   :  { %s32_s2 = sshll.u32 %s1089_s13, 4  ;;  %s56_s16 = sshll.u32 %s1308_s4, 4  ;;  %s33_s2 = int_to_ptr.vmem [resolvable:$true] %s32_s2  ;;  %s57_s16 = int_to_ptr.hbm [resolvable:$true] %s56_s16 }
   0xa   :  { %s1090_s17 = smov 32   ;;  %s1091_s18 = smov 2  }
   0xb   :  { %38 = dma.hbm_to_vmem [thread:$0]  %s31_s12, 256, %s33_s2, [#allocation4], %s1090_s17, %s1090_s17, %s1091_s18  }
   0xc   :  { %s1092_s0 = smov [#allocation10]   ;;  %s1093_s20 = smov 64  }
   0xd   :  { %s58_s19 = sshll.u32 %s1092_s0, 4  ;;  %s1094_s1 = smov 4   ;;  %s59_s19 = int_to_ptr.vmem [resolvable:$true] %s58_s19 }
   0xe   :  { %64 = dma.hbm_to_vmem [thread:$0]  %s57_s16, 128, %s59_s19, [#allocation9], %s1093_s20, %s1093_s20, %s1094_s1  }
   0xf   :  { %s69_s23 = sshll.u32 %s1309_s5, 4  ;;  %s1095_s4 = smov [#allocation11]   ;;  %s70_s23 = int_to_ptr.hbm [resolvable:$true] %s69_s23 }
  0x10   :  { %s71_s24 = sshll.u32 %s1095_s4, 4  ;;  %s72_s24 = int_to_ptr.vmem [resolvable:$true] %s71_s24 }
  0x11   :  { %77 = dma.hbm_to_vmem [thread:$0]  %s70_s23, 1024, %s72_s24, [#allocation12], %s1093_s20, %s1093_s20, %s1094_s1  }
  0x12   :  { %1077 = dma.done.wait [#allocation6], 16  }
  0x13   :  { %1078 = vsyncadd [#allocation6], 4294967280 }
  0x14   :  { %1079 = dma.done.wait [#allocation4], 256  }
  0x15   :  { %1080 = vsyncadd [#allocation4], 4294967040 }
  0x16   :  { %1081 = dma.done.wait [#allocation9], 160  }
  0x17   :  { %1082 = vsyncadd [#allocation9], 4294967136 }
  0x18   :  { %1083 = dma.done.wait [#allocation12], 1024  }
  0x19   :  { %1084 = vsyncadd [#allocation12], 4294966272 }
  0x1a   :  { %100 = sfence }
  0x1b   :  { %v106_v0 = vld [vmem:[#allocation8] sm:$0x3]  ;;  %v1096_v1 = vmov 0.1   ;;  %v147_v2 = vld [vmem:[%s1307_s3] sm:$0x3] }
  0x1c   :  { %863 = vrcp.f32 %v1096_v1  ;;  %v112_v3 = vsub.f32 1.0, %v106_v0  ;;  %v148_v4 = vadd.f32 1e-07, %v147_v2  ;;  %v153_v5 = vsub.f32 1.0, %v147_v2  ;;  %s791_s26 = sld [smem:[#allocation3 + $0x1]]  ;;  %v1164_v32 = vld [vmem:[#allocation11 + $0x38] sm:$0xff] }
  0x1d   :  { %v107_v6 = vadd.f32 1e-07, %v106_v0  ;;  %s102_s3 = sld [smem:[#allocation3]]  ;;  %v841_v33 = vld [vmem:[#allocation10] sm:$0xff]  ;;  %357 = vmatpush.bf16.msra.mxu1 %v1164_v32  ;;  %v1167_v35 = vld [vmem:[#allocation11 + $0x30] sm:$0xff]  ;;  %407 = vmatpush.bf16.msra.mxu2 %v1164_v32  ;;  %v1173_v38 = vld [vmem:[#allocation11 + $0x28] sm:$0xff] }
  0x1e   :  { %v154_v7 = vadd.f32 1e-07, %v153_v5  ;;  %865 = vlog2.f32 %v148_v4  ;;  %v113_v9 = vadd.f32 1e-07, %v112_v3  ;;  %257 = vmatpush.bf16.msra.mxu0 %v841_v33  ;;  %459 = vmatpush.bf16.msra.mxu3 %v1164_v32  ;;  %v1179_v40 = vld [vmem:[#allocation11 + $0x20] sm:$0xff]  ;;  %s1184_s27 = sld [smem:[#allocation3 + $0x3]] }
  0x1f   :  { %s1190_s28 = sld [smem:[#allocation3 + $0x2]]  ;;  %v1193_v55 = vld [vmem:[#allocation11 + $0x18] sm:$0xff]  ;;  %v1196_v60 = vld [vmem:[#allocation11 + $0x10] sm:$0xff]  ;;  %s1097_s29 = smov 96   ;;  %v1203_v1 = vld [vmem:[#allocation11 + $0x8] sm:$0xff]  ;;  %vm247_vm9 = vcmask 130048  }
  0x20   :  { %867 = vlog2.f32 %v154_v7  ;;  %v188_v7 = vld [vmem:[#allocation7 + $0x2] sm:$0x3]  ;;  %v842_v33 = vld [vmem:[#allocation11] sm:$0xff]  ;;  %vm185_vm10 = vcmask 785408   ;;  %s775_s12 = sshll.u32 %s1311_s7, 4  ;;  %s776_s12 = int_to_ptr.hbm [resolvable:$true] %s775_s12 }
  0x21   :  { %869 = vlog2.f32 %v107_v6  ;;  %358 = vmatpush.bf16.msra.mxu1 %v1167_v35  ;;  %408 = vmatpush.bf16.msra.mxu2 %v1167_v35  ;;  %v187_v6 = vld [vmem:[#allocation7] sm:$0x3] }
  0x22   :  { %v864_v8 = vpop.eup %863  ;;  %871 = vlog2.f32 %v113_v9  ;;  %v151_v14 = vstv %s791_s26  ;;  %511 = vmatpush.bf16.msrb.mxu0 %v1164_v32  ;;  %460 = vmatpush.bf16.msra.mxu3 %v1167_v35  ;;  %v190_v9 = vld [vmem:[#allocation7 + $0x6] sm:$0x3] }
  0x23   :  { %v118_v10 = vmul.f32 0.1, %v864_v8  ;;  %vm122_vm0 = vweird.f32 %v864_v8  ;;  %v110_v28 = vstv %s102_s3 }
  0x24   :  { %v866_v12 = vpop.eup %865  ;;  %v179_v53 = vstv %s1184_s27 }
  0x25   :  { %v119_v11 = vsub.f32 1.0, %v118_v10  ;;  %v150_v16 = vmul.f32 0.6931472, %v866_v12  ;;  %359 = vmatpush.bf16.msra.mxu1 %v1173_v38  ;;  %409 = vmatpush.bf16.msra.mxu2 %v1173_v38  ;;  %v145_v3 = vstv %s1190_s28  ;;  %v192_v12 = vld [vmem:[#allocation7 + $0xa] sm:$0x3] }
  0x26   :  { %v868_v15 = vpop.eup %867  ;;  %512 = vmatpush.bf16.msrb.mxu0 %v1167_v35  ;;  %461 = vmatpush.bf16.msra.mxu3 %v1173_v38 }
  0x27   :  { %v120_v13 = vmul.f32 %v864_v8, %v119_v11  ;;  %v156_v18 = vmul.f32 0.6931472, %v868_v15  ;;  %v870_v19 = vpop.eup %869  ;;  %v152_v20 = vadd.f32 %v151_v14, %v150_v16  ;;  %v191_v11 = vld [vmem:[#allocation7 + $0x8] sm:$0x3]  ;;  %v194_v14 = vld [vmem:[#allocation7 + $0xe] sm:$0x3] }
  0x28   :  { %v872_v22 = vpop.eup %871  ;;  %v109_v24 = vmul.f32 0.6931472, %v870_v19 }
  0x29   :  { %v121_v17 = vadd.f32 %v864_v8, %v120_v13  ;;  %v157_v23 = vsub.f32 %v152_v20, %v156_v18  ;;  %v115_v26 = vmul.f32 0.6931472, %v872_v22  ;;  %360 = vmatpush.bf16.msra.mxu1 %v1179_v40  ;;  %410 = vmatpush.bf16.msra.mxu2 %v1179_v40  ;;  %v193_v13 = vld [vmem:[#allocation7 + $0xc] sm:$0x3] }
  0x2a   :  { %v111_v29 = vadd.f32 %v110_v28, %v109_v24  ;;  %513 = vmatpush.bf16.msrb.mxu0 %v1173_v38  ;;  %462 = vmatpush.bf16.msra.mxu3 %v1179_v40 }
  0x2b   :  { %v123_v21 = vsel %vm122_vm0, %v864_v8, %v121_v17  ;;  %v189_v8 = vld [vmem:[#allocation7 + $0x4] sm:$0x3] }
  0x2c   :  { %v158_v25 = vmul.f32 %v157_v23, %v123_v21  ;;  %v116_v30 = vsub.f32 %v111_v29, %v115_v26 }
  0x2d   :  { %361 = vmatpush.bf16.msra.mxu1 %v1193_v55  ;;  %411 = vmatpush.bf16.msra.mxu2 %v1193_v55 }
  0x2e   :  { %v795_v27 = vmul.f32 -1.442695, %v158_v25  ;;  %v124_v31 = vmul.f32 %v123_v21, %v116_v30  ;;  %514 = vmatpush.bf16.msrb.mxu0 %v1179_v40  ;;  %463 = vmatpush.bf16.msra.mxu3 %v1193_v55 }
  0x30   :  { %873 = vpow2.f32 %v795_v27  ;;  %v794_v34 = vmul.f32 -1.442695, %v124_v31 }
  0x31   :  { %362 = vmatpush.bf16.msra.mxu1 %v1196_v60  ;;  %412 = vmatpush.bf16.msra.mxu2 %v1196_v60 }
  0x32   :  { %875 = vpow2.f32 %v794_v34  ;;  %515 = vmatpush.bf16.msrb.mxu0 %v1193_v55  ;;  %464 = vmatpush.bf16.msra.mxu3 %v1196_v60 }
  0x35   :  { %363 = vmatpush.bf16.msra.mxu1 %v1203_v1  ;;  %413 = vmatpush.bf16.msra.mxu2 %v1203_v1 }
  0x36   :  { %v874_v36 = vpop.eup %873  ;;  %516 = vmatpush.bf16.msrb.mxu0 %v1196_v60  ;;  %465 = vmatpush.bf16.msra.mxu3 %v1203_v1 }
  0x37   :  { %v162_v37 = vadd.f32 1.0, %v874_v36 }
  0x38   :  { %v876_v39 = vpop.eup %875 }
  0x39   :  { %877 = vrcp.f32 %v162_v37  ;;  %v128_v41 = vadd.f32 1.0, %v876_v39  ;;  %v174_v44 = vand.u32 2147483648, %v162_v37  ;;  %vm168_vm1 = vweird.f32 %v162_v37  ;;  %364 = vmatpush.bf16.msra.mxu1 %v842_v33  ;;  %414 = vmatpush.bf16.msra.mxu2 %v842_v33 }
  0x3a   :  { %v172_v46 = vand.u32 2147483647, %v162_v37  ;;  %517 = vmatpush.bf16.msrb.mxu0 %v1203_v1  ;;  %466 = vmatpush.bf16.msra.mxu3 %v842_v33 }
  0x3b   :  { %879 = vrcp.f32 %v128_v41  ;;  %v175_v48 = vor.u32 1.1754944e-38, %v174_v44  ;;  %vm134_vm5 = vweird.f32 %v128_v41  ;;  %v140_v54 = vand.u32 2147483648, %v128_v41 }
  0x3c   :  { %vm173_vm4 = vcmp.eq.f32.partialorder %v172_v46, 8.507059e+37  ;;  %v138_v58 = vand.u32 2147483647, %v128_v41 }
  0x3d   :  { %v141_v63 = vor.u32 1.1754944e-38, %v140_v54  ;;  %563 = vmatpush.bf16.msrb.mxu1 %v1164_v32  ;;  %615 = vmatpush.bf16.msrb.mxu2 %v1164_v32 }
  0x3e   :  { %vm139_vm8 = vcmp.eq.f32.partialorder %v138_v58, 8.507059e+37  ;;  %518 = vmatpush.bf16.msrb.mxu0 %v842_v33  ;;  %667 = vmatpush.bf16.msrb.mxu3 %v1164_v32 }
  0x3f   :  { %v878_v42 = vpop.eup %877 }
  0x40   :  { %v164_v43 = vmul.f32 %v878_v42, %v162_v37  ;;  %vm169_vm2 = vweird.f32 %v878_v42  ;;  %v862_v37 = vld [vmem:[%s1310_s6] ss:$0 sm:$0xff]  ;;  %s1098_s6 = smov [#allocation13]  }
  0x41   :  { %vm170_vm3 = vmor %vm168_vm1, %vm169_vm2  ;;  %v880_v49 = vpop.eup %879  ;;  %564 = vmatpush.bf16.msrb.mxu1 %v1167_v35  ;;  %616 = vmatpush.bf16.msrb.mxu2 %v1167_v35  ;;  %s773_s9 = sshll.u32 %s1098_s6, 4  ;;  %s774_s9 = int_to_ptr.vmem [resolvable:$true] %s773_s9 }
  0x42   :  { %v165_v45 = vsub.f32 1.0, %v164_v43  ;;  %v130_v51 = vmul.f32 %v880_v49, %v128_v41  ;;  %vm135_vm6 = vweird.f32 %v880_v49  ;;  %668 = vmatpush.bf16.msrb.mxu3 %v1167_v35 }
  0x43   :  { %vm136_vm7 = vmor %vm134_vm5, %vm135_vm6 }
  0x44   :  { %v166_v47 = vmul.f32 %v878_v42, %v165_v45  ;;  %v131_v57 = vsub.f32 1.0, %v130_v51 }
  0x45   :  { %565 = vmatpush.bf16.msrb.mxu1 %v1173_v38  ;;  %617 = vmatpush.bf16.msrb.mxu2 %v1173_v38 }
  0x46   :  { %v167_v50 = vadd.f32 %v878_v42, %v166_v47  ;;  %v132_v61 = vmul.f32 %v880_v49, %v131_v57  ;;  %669 = vmatpush.bf16.msrb.mxu3 %v1173_v38 }
  0x48   :  { %v171_v52 = vsel %vm170_vm3, %v878_v42, %v167_v50  ;;  %v133_v0 = vadd.f32 %v880_v49, %v132_v61 }
  0x49   :  { %v176_v56 = vsel %vm173_vm4, %v175_v48, %v171_v52  ;;  %566 = vmatpush.bf16.msrb.mxu1 %v1179_v40  ;;  %618 = vmatpush.bf16.msrb.mxu2 %v1179_v40 }
  0x4a   :  { %v178_v59 = vsub.f32 1.0, %v176_v56  ;;  %v137_v2 = vsel %vm136_vm7, %v880_v49, %v133_v0  ;;  %670 = vmatpush.bf16.msrb.mxu3 %v1179_v40 }
  0x4b   :  { %v142_v4 = vsel %vm139_vm8, %v141_v63, %v137_v2 }
  0x4c   :  { %v180_v62 = vmul.f32 %v179_v53, %v178_v59  ;;  %v144_v5 = vsub.f32 1.0, %v142_v4 }
  0x4d   :  { %567 = vmatpush.bf16.msrb.mxu1 %v1193_v55  ;;  %619 = vmatpush.bf16.msrb.mxu2 %v1193_v55 }
  0x4e   :  { %182 = vrot.lane.b32.xlu0 %v180_v62, %s1097_s29  ;;  %v146_v10 = vmul.f32 %v145_v3, %v144_v5  ;;  %671 = vmatpush.bf16.msrb.mxu3 %v1193_v55 }
  0x50   :  { %v195_v15 = vmul.f32 %v187_v6, %v146_v10  ;;  %v196_v16 = vmul.f32 %v188_v7, %v146_v10  ;;  %v197_v17 = vmul.f32 %v189_v8, %v146_v10  ;;  %v198_v18 = vmul.f32 %v190_v9, %v146_v10 }
  0x51   :  { %v199_v19 = vmul.f32 %v191_v11, %v146_v10  ;;  %v200_v20 = vmul.f32 %v192_v12, %v146_v10  ;;  %v201_v21 = vmul.f32 %v193_v13, %v146_v10  ;;  %v202_v25 = vmul.f32 %v194_v14, %v146_v10  ;;  %568 = vmatpush.bf16.msrb.mxu1 %v1196_v60 }
  0x52   :  { %v203_v22 = vpack.c.bf16 %v195_v15, %v195_v15  ;;  %v204_v23 = vpack.c.bf16 %v196_v16, %v196_v16  ;;  %v205_v24 = vpack.c.bf16 %v197_v17, %v197_v17  ;;  %v206_v26 = vpack.c.bf16 %v198_v18, %v198_v18  ;;  %620 = vmatpush.bf16.msrb.mxu2 %v1196_v60 }
  0x53   :  { %v207_v27 = vpack.c.bf16 %v199_v19, %v199_v19  ;;  %v208_v28 = vpack.c.bf16 %v200_v20, %v200_v20  ;;  %v209_v29 = vpack.c.bf16 %v201_v21, %v201_v21  ;;  %v210_v30 = vpack.c.bf16 %v202_v25, %v202_v25  ;;  %672 = vmatpush.bf16.msrb.mxu3 %v1196_v60 }
  0x54   :  { %218 = vst [vmem:[#allocation1] ss:$9 sm:$0xff] %v203_v22 }
  0x55   :  { %221 = vst [vmem:[#allocation1 + $0x1] ss:$9 sm:$0xff] %v204_v23  ;;  %569 = vmatpush.bf16.msrb.mxu1 %v1203_v1 }
  0x56   :  { %224 = vst [vmem:[#allocation1 + $0x2] ss:$9 sm:$0xff] %v205_v24  ;;  %621 = vmatpush.bf16.msrb.mxu2 %v1203_v1 }
  0x57   :  { %227 = vst [vmem:[#allocation1 + $0x3] ss:$9 sm:$0xff] %v206_v26  ;;  %673 = vmatpush.bf16.msrb.mxu3 %v1203_v1 }
  0x58   :  { %230 = vst [vmem:[#allocation1 + $0x4] ss:$9 sm:$0xff] %v207_v27 }
  0x59   :  { %233 = vst [vmem:[#allocation1 + $0x5] ss:$9 sm:$0xff] %v208_v28  ;;  %570 = vmatpush.bf16.msrb.mxu1 %v842_v33 }
  0x5a   :  { %236 = vst [vmem:[#allocation1 + $0x6] ss:$9 sm:$0xff] %v209_v29  ;;  %622 = vmatpush.bf16.msrb.mxu2 %v842_v33 }
  0x5b   :  { %239 = vst [vmem:[#allocation1 + $0x7] ss:$9 sm:$0xff] %v210_v30  ;;  %674 = vmatpush.bf16.msrb.mxu3 %v842_v33 }
  0x62   :  { %v240_v31 = vld [vmem:[#allocation1] sm:$0xff] }
  0x63   :  { %800 = vmatmul.msk.bf16.vlgmr.msra.gmra.mxu0 %vm247_vm9, %v240_v31 }
  0x64   :  { %719 = vmatpush.bf16.msra.mxu0 %v1164_v32 }
  0x68   :  { %720 = vmatpush.bf16.msra.mxu0 %v1167_v35 }
  0x6c   :  { %721 = vmatpush.bf16.msra.mxu0 %v1173_v38 }
  0x70   :  { %722 = vmatpush.bf16.msra.mxu0 %v1179_v40 }
  0x74   :  { %723 = vmatpush.bf16.msra.mxu0 %v1193_v55  ;;  %v302_v55 = vlaneseq }
  0x76   :  { %v303_v57 = vand.u32 127, %v302_v55 }
  0x78   :  { %724 = vmatpush.bf16.msra.mxu0 %v1196_v60  ;;  %vm304_vm11 = vcmp.ge.s32.totalorder %v303_v57, 64  ;;  %vm305_vm12 = vcmp.lt.s32.totalorder %v303_v57, 96 }
  0x79   :  { %vm1247_vm14 = vmand %vm304_vm11, %vm305_vm12 }
  0x7c   :  { %725 = vmatpush.bf16.msra.mxu0 %v1203_v1 }
  0x80   :  { %726 = vmatpush.bf16.msra.mxu0 %v842_v33 }
  0xc0   :  { %v183_v32 = vpop.permute.xlu0 %182 }
  0xc1   :  { %v1241_v34 = vsel %vm185_vm10, 0.0, %v183_v32 }
  0xc2   :  { %v307_v35 = vmul.f32 0.0, %v1241_v34 }
  0xc4   :  { %v308_v36 = vpack.c.bf16 %v307_v35, %v307_v35 }
  0xc6   :  { %365 = vmatmul.bf16.vlgmr.msra.gmra.mxu1 %v308_v36 }
  0xe0   :  { %v259_v38 = vpop.f32.mrf.mxu0 }
  0xe1   :  { %v260_v39 = vadd.f32 %v862_v37, %v259_v38 }
  0xe3   :  { %v266_v40 = vrot.slane %v260_v39, 2  ;;  %v267_v41 = vrot.slane %v260_v39, 4  ;;  %v268_v42 = vrot.slane %v260_v39, 6  ;;  %278 = vst [vmem:[#allocation2] sm:$0x3] %v260_v39 }
  0xe5   :  { %279 = vst [vmem:[#allocation2 + $0x2] sm:$0x3] %v266_v40 }
  0xe6   :  { %280 = vst [vmem:[#allocation2 + $0x4] sm:$0x3] %v267_v41 }
  0xe7   :  { %281 = vst [vmem:[#allocation2 + $0x6] sm:$0x3] %v268_v42 }
  0xe8   :  { %v261_v43 = vpop.f32.mrf.mxu0 }
  0xe9   :  { %v262_v44 = vadd.f32 %v862_v37, %v261_v43 }
  0xea   :  { %v370_v48 = vld [vmem:[#allocation2] sm:$0x3] }
  0xeb   :  { %v269_v45 = vrot.slane %v262_v44, 2  ;;  %v270_v46 = vrot.slane %v262_v44, 4  ;;  %v271_v47 = vrot.slane %v262_v44, 6  ;;  %282 = vst [vmem:[#allocation2 + $0x8] sm:$0x3] %v262_v44 }
  0xec   :  { %v421_v17 = vld [vmem:[#allocation2 + $0x2] sm:$0x3] }
  0xed   :  { %283 = vst [vmem:[#allocation2 + $0xa] sm:$0x3] %v269_v45 }
  0xee   :  { %284 = vst [vmem:[#allocation2 + $0xc] sm:$0x3] %v270_v46 }
  0xef   :  { %285 = vst [vmem:[#allocation2 + $0xe] sm:$0x3] %v271_v47  ;;  %v473_v47 = vld [vmem:[#allocation2 + $0x4] sm:$0x3] }
 0x143   :  { %v366_v49 = vpop.f32.mrf.mxu1 }
 0x144   :  { %v371_v50 = vadd.f32 %v370_v48, %v366_v49 }
 0x146   :  { %v833_v51 = vmul.f32 -1.442695, %v371_v50 }
 0x148   :  { %881 = vpow2.f32 %v833_v51 }
 0x14b   :  { %v368_v52 = vpop.f32.mrf.mxu1 }
 0x14e   :  { %v882_v53 = vpop.eup %881 }
 0x14f   :  { %v376_v54 = vadd.f32 1.0, %v882_v53 }
 0x151   :  { %883 = vrcp.f32 %v376_v54  ;;  %v388_v60 = vand.u32 2147483648, %v376_v54  ;;  %v386_v62 = vand.u32 2147483647, %v376_v54  ;;  %vm382_vm15 = vweird.f32 %v376_v54 }
 0x152   :  { %885 = vtanh.f32 %v371_v50 }
 0x153   :  { %v389_v1 = vor.u32 1.1754944e-38, %v388_v60  ;;  %vm387_vm1 = vcmp.eq.f32.partialorder %v386_v62, 8.507059e+37 }
 0x157   :  { %v884_v56 = vpop.eup %883 }
 0x158   :  { %v378_v58 = vmul.f32 %v884_v56, %v376_v54  ;;  %vm383_vm13 = vweird.f32 %v884_v56  ;;  %v886_v3 = vpop.eup %885 }
 0x159   :  { %vm384_vm0 = vmor %vm382_vm15, %vm383_vm13 }
 0x15a   :  { %v379_v59 = vsub.f32 1.0, %v378_v58 }
 0x15c   :  { %v380_v61 = vmul.f32 %v884_v56, %v379_v59 }
 0x15e   :  { %v381_v0 = vadd.f32 %v884_v56, %v380_v61 }
 0x160   :  { %v385_v2 = vsel %vm384_vm0, %v884_v56, %v381_v0 }
 0x161   :  { %v390_v4 = vsel %vm387_vm1, %v389_v1, %v385_v2 }
 0x162   :  { %v392_v5 = vsel %vm1247_vm14, %v886_v3, %v390_v4 }
 0x163   :  { %393 = vrot.lane.b32.xlu0 %v392_v5, %s1093_s20  ;;  %v396_v8 = vmul.f32 0.0, %v392_v5 }
 0x1d5   :  { %v394_v6 = vpop.permute.xlu0 %393 }
 0x1d6   :  { %v395_v7 = vmul.f32 %v394_v6, %v392_v5 }
 0x1d8   :  { %397 = vrot.lane.b32.xlu1 %v395_v7, %s1090_s17 }
 0x24a   :  { %v398_v9 = vpop.permute.xlu1 %397 }
 0x24b   :  { %v399_v10 = vadd.f32 %v398_v9, %v396_v8 }
 0x24d   :  { %887 = vtanh.f32 %v399_v10 }
 0x253   :  { %v888_v11 = vpop.eup %887 }
 0x254   :  { %401 = vrot.lane.b32.xlu1 %v888_v11, %s1093_s20 }
 0x2c6   :  { %v402_v12 = vpop.permute.xlu1 %401 }
 0x2c7   :  { %v403_v13 = vmul.f32 %v402_v12, %v392_v5 }
 0x2c9   :  { %404 = vst [vmem:[#allocation13] sm:$0x3] %v403_v13  ;;  %v405_v14 = vmul.f32 %v403_v13, %v1241_v34  ;;  %v525_v13 = vld [vmem:[#allocation2 + $0x6] sm:$0x3] }
 0x2cb   :  { %v406_v15 = vpack.c.bf16 %v405_v14, %v405_v14 }
 0x2cd   :  { %415 = vmatmul.bf16.vlgmr.msra.gmra.mxu2 %v406_v15 }
 0x350   :  { %v416_v16 = vpop.f32.mrf.mxu2 }
 0x351   :  { %v422_v18 = vadd.f32 %v421_v17, %v416_v16 }
 0x353   :  { %v834_v19 = vmul.f32 -1.442695, %v422_v18 }
 0x355   :  { %889 = vpow2.f32 %v834_v19 }
 0x358   :  { %v418_v20 = vpop.f32.mrf.mxu2 }
 0x35b   :  { %v890_v21 = vpop.eup %889 }
 0x35c   :  { %v427_v22 = vadd.f32 1.0, %v890_v21 }
 0x35e   :  { %891 = vrcp.f32 %v427_v22  ;;  %v439_v26 = vand.u32 2147483648, %v427_v22  ;;  %v437_v28 = vand.u32 2147483647, %v427_v22  ;;  %vm433_vm3 = vweird.f32 %v427_v22 }
 0x35f   :  { %893 = vtanh.f32 %v422_v18 }
 0x360   :  { %v440_v30 = vor.u32 1.1754944e-38, %v439_v26  ;;  %vm438_vm5 = vcmp.eq.f32.partialorder %v437_v28, 8.507059e+37 }
 0x364   :  { %v892_v23 = vpop.eup %891 }
 0x365   :  { %v429_v24 = vmul.f32 %v892_v23, %v427_v22  ;;  %vm434_vm2 = vweird.f32 %v892_v23  ;;  %v894_v33 = vpop.eup %893 }
 0x366   :  { %vm435_vm4 = vmor %vm433_vm3, %vm434_vm2 }
 0x367   :  { %v430_v25 = vsub.f32 1.0, %v429_v24 }
 0x369   :  { %v431_v27 = vmul.f32 %v892_v23, %v430_v25 }
 0x36b   :  { %v432_v29 = vadd.f32 %v892_v23, %v431_v27 }
 0x36d   :  { %v436_v31 = vsel %vm435_vm4, %v892_v23, %v432_v29 }
 0x36e   :  { %v441_v32 = vsel %vm438_vm5, %v440_v30, %v436_v31 }
 0x36f   :  { %v443_v35 = vsel %vm1247_vm14, %v894_v33, %v441_v32 }
 0x370   :  { %444 = vrot.lane.b32.xlu2 %v443_v35, %s1093_s20  ;;  %v447_v38 = vmul.f32 %v443_v35, %v399_v10 }
 0x3ca   :  { %v445_v36 = vpop.permute.xlu2 %444 }
 0x3cb   :  { %v446_v37 = vmul.f32 %v445_v36, %v443_v35 }
 0x3cd   :  { %448 = vrot.lane.b32.xlu2 %v446_v37, %s1090_s17 }
 0x427   :  { %v449_v39 = vpop.permute.xlu2 %448 }
 0x428   :  { %v450_v40 = vadd.f32 %v449_v39, %v447_v38 }
 0x42a   :  { %895 = vtanh.f32 %v450_v40 }
 0x430   :  { %v896_v41 = vpop.eup %895 }
 0x431   :  { %452 = vrot.lane.b32.xlu0 %v896_v41, %s1093_s20 }
 0x4a3   :  { %v453_v42 = vpop.permute.xlu0 %452 }
 0x4a4   :  { %v454_v43 = vmul.f32 %v453_v42, %v443_v35 }
 0x4a6   :  { %456 = vst [vmem:[#allocation13 + $0x2] sm:$0x3] %v454_v43  ;;  %v457_v44 = vmul.f32 %v454_v43, %v1241_v34  ;;  %v577_v43 = vld [vmem:[#allocation2 + $0x8] sm:$0x3] }
 0x4a8   :  { %v458_v45 = vpack.c.bf16 %v457_v44, %v457_v44 }
 0x4aa   :  { %467 = vmatmul.bf16.vlgmr.msra.gmra.mxu3 %v458_v45 }
 0x52d   :  { %v468_v46 = vpop.f32.mrf.mxu3 }
 0x52e   :  { %v474_v48 = vadd.f32 %v473_v47, %v468_v46 }
 0x530   :  { %v835_v49 = vmul.f32 -1.442695, %v474_v48 }
 0x532   :  { %897 = vpow2.f32 %v835_v49 }
 0x535   :  { %v470_v50 = vpop.f32.mrf.mxu3 }
 0x538   :  { %v898_v51 = vpop.eup %897 }
 0x539   :  { %v479_v52 = vadd.f32 1.0, %v898_v51 }
 0x53b   :  { %899 = vrcp.f32 %v479_v52  ;;  %v491_v56 = vand.u32 2147483648, %v479_v52  ;;  %v489_v58 = vand.u32 2147483647, %v479_v52  ;;  %vm485_vm7 = vweird.f32 %v479_v52 }
 0x53c   :  { %901 = vtanh.f32 %v474_v48 }
 0x53d   :  { %v492_v60 = vor.u32 1.1754944e-38, %v491_v56  ;;  %vm490_vm9 = vcmp.eq.f32.partialorder %v489_v58, 8.507059e+37 }
 0x541   :  { %v900_v53 = vpop.eup %899 }
 0x542   :  { %v481_v54 = vmul.f32 %v900_v53, %v479_v52  ;;  %vm486_vm6 = vweird.f32 %v900_v53  ;;  %v902_v62 = vpop.eup %901 }
 0x543   :  { %vm487_vm8 = vmor %vm485_vm7, %vm486_vm6 }
 0x544   :  { %v482_v55 = vsub.f32 1.0, %v481_v54 }
 0x546   :  { %v483_v57 = vmul.f32 %v900_v53, %v482_v55 }
 0x548   :  { %v484_v59 = vadd.f32 %v900_v53, %v483_v57 }
 0x54a   :  { %v488_v61 = vsel %vm487_vm8, %v900_v53, %v484_v59 }
 0x54b   :  { %v493_v0 = vsel %vm490_vm9, %v492_v60, %v488_v61 }
 0x54c   :  { %v495_v1 = vsel %vm1247_vm14, %v902_v62, %v493_v0 }
 0x54d   :  { %496 = vrot.lane.b32.xlu1 %v495_v1, %s1093_s20  ;;  %v499_v4 = vmul.f32 %v495_v1, %v450_v40 }
 0x5bf   :  { %v497_v2 = vpop.permute.xlu1 %496 }
 0x5c0   :  { %v498_v3 = vmul.f32 %v497_v2, %v495_v1 }
 0x5c2   :  { %500 = vrot.lane.b32.xlu2 %v498_v3, %s1090_s17 }
 0x61c   :  { %v501_v5 = vpop.permute.xlu2 %500 }
 0x61d   :  { %v502_v6 = vadd.f32 %v501_v5, %v499_v4 }
 0x61f   :  { %903 = vtanh.f32 %v502_v6 }
 0x625   :  { %v904_v7 = vpop.eup %903 }
 0x626   :  { %504 = vrot.lane.b32.xlu0 %v904_v7, %s1093_s20 }
 0x698   :  { %v505_v8 = vpop.permute.xlu0 %504 }
 0x699   :  { %v506_v9 = vmul.f32 %v505_v8, %v495_v1 }
 0x69b   :  { %508 = vst [vmem:[#allocation13 + $0x4] sm:$0x3] %v506_v9  ;;  %v509_v10 = vmul.f32 %v506_v9, %v1241_v34  ;;  %v629_v9 = vld [vmem:[#allocation2 + $0xa] sm:$0x3] }
 0x69d   :  { %v510_v11 = vpack.c.bf16 %v509_v10, %v509_v10 }
 0x69f   :  { %519 = vmatmul.bf16.vlgmr.msrb.gmra.mxu0 %v510_v11 }
 0x71c   :  { %v520_v12 = vpop.f32.mrf.mxu0 }
 0x71d   :  { %v526_v14 = vadd.f32 %v525_v13, %v520_v12 }
 0x71f   :  { %v836_v15 = vmul.f32 -1.442695, %v526_v14 }
 0x721   :  { %905 = vpow2.f32 %v836_v15 }
 0x724   :  { %v522_v16 = vpop.f32.mrf.mxu0 }
 0x727   :  { %v906_v17 = vpop.eup %905 }
 0x728   :  { %v531_v18 = vadd.f32 1.0, %v906_v17 }
 0x72a   :  { %907 = vrcp.f32 %v531_v18  ;;  %v543_v22 = vand.u32 2147483648, %v531_v18  ;;  %v541_v24 = vand.u32 2147483647, %v531_v18  ;;  %vm537_vm11 = vweird.f32 %v531_v18 }
 0x72b   :  { %909 = vtanh.f32 %v526_v14 }
 0x72c   :  { %v544_v26 = vor.u32 1.1754944e-38, %v543_v22  ;;  %vm542_vm13 = vcmp.eq.f32.partialorder %v541_v24, 8.507059e+37 }
 0x730   :  { %v908_v19 = vpop.eup %907 }
 0x731   :  { %v533_v20 = vmul.f32 %v908_v19, %v531_v18  ;;  %vm538_vm10 = vweird.f32 %v908_v19  ;;  %v910_v28 = vpop.eup %909 }
 0x732   :  { %vm539_vm12 = vmor %vm537_vm11, %vm538_vm10 }
 0x733   :  { %v534_v21 = vsub.f32 1.0, %v533_v20 }
 0x735   :  { %v535_v23 = vmul.f32 %v908_v19, %v534_v21 }
 0x737   :  { %v536_v25 = vadd.f32 %v908_v19, %v535_v23 }
 0x739   :  { %v540_v27 = vsel %vm539_vm12, %v908_v19, %v536_v25 }
 0x73a   :  { %v545_v29 = vsel %vm542_vm13, %v544_v26, %v540_v27 }
 0x73b   :  { %v547_v30 = vsel %vm1247_vm14, %v910_v28, %v545_v29 }
 0x73c   :  { %548 = vrot.lane.b32.xlu1 %v547_v30, %s1093_s20  ;;  %v551_v32 = vmul.f32 %v547_v30, %v502_v6 }
 0x7ae   :  { %v549_v31 = vpop.permute.xlu1 %548 }
 0x7af   :  { %v550_v33 = vmul.f32 %v549_v31, %v547_v30 }
 0x7b1   :  { %552 = vrot.lane.b32.xlu2 %v550_v33, %s1090_s17 }
 0x80b   :  { %v553_v35 = vpop.permute.xlu2 %552 }
 0x80c   :  { %v554_v36 = vadd.f32 %v553_v35, %v551_v32 }
 0x80e   :  { %911 = vtanh.f32 %v554_v36 }
 0x814   :  { %v912_v37 = vpop.eup %911 }
 0x815   :  { %556 = vrot.lane.b32.xlu0 %v912_v37, %s1093_s20 }
 0x887   :  { %v557_v38 = vpop.permute.xlu0 %556 }
 0x888   :  { %v558_v39 = vmul.f32 %v557_v38, %v547_v30 }
 0x88a   :  { %560 = vst [vmem:[#allocation13 + $0x6] sm:$0x3] %v558_v39  ;;  %v561_v40 = vmul.f32 %v558_v39, %v1241_v34  ;;  %v681_v39 = vld [vmem:[#allocation2 + $0xc] sm:$0x3] }
 0x88c   :  { %v562_v41 = vpack.c.bf16 %v561_v40, %v561_v40 }
 0x88e   :  { %571 = vmatmul.bf16.vlgmr.msrb.gmra.mxu1 %v562_v41 }
 0x90b   :  { %v572_v42 = vpop.f32.mrf.mxu1 }
 0x90c   :  { %v578_v44 = vadd.f32 %v577_v43, %v572_v42 }
 0x90e   :  { %v837_v45 = vmul.f32 -1.442695, %v578_v44 }
 0x910   :  { %913 = vpow2.f32 %v837_v45 }
 0x913   :  { %v574_v46 = vpop.f32.mrf.mxu1 }
 0x916   :  { %v914_v47 = vpop.eup %913 }
 0x917   :  { %v583_v48 = vadd.f32 1.0, %v914_v47 }
 0x919   :  { %915 = vrcp.f32 %v583_v48  ;;  %v595_v52 = vand.u32 2147483648, %v583_v48  ;;  %v593_v54 = vand.u32 2147483647, %v583_v48  ;;  %vm589_vm0 = vweird.f32 %v583_v48 }
 0x91a   :  { %917 = vtanh.f32 %v578_v44 }
 0x91b   :  { %v596_v56 = vor.u32 1.1754944e-38, %v595_v52  ;;  %vm594_vm2 = vcmp.eq.f32.partialorder %v593_v54, 8.507059e+37 }
 0x91f   :  { %v916_v49 = vpop.eup %915 }
 0x920   :  { %v585_v50 = vmul.f32 %v916_v49, %v583_v48  ;;  %vm590_vm15 = vweird.f32 %v916_v49  ;;  %v918_v58 = vpop.eup %917 }
 0x921   :  { %vm591_vm1 = vmor %vm589_vm0, %vm590_vm15 }
 0x922   :  { %v586_v51 = vsub.f32 1.0, %v585_v50 }
 0x924   :  { %v587_v53 = vmul.f32 %v916_v49, %v586_v51 }
 0x926   :  { %v588_v55 = vadd.f32 %v916_v49, %v587_v53 }
 0x928   :  { %v592_v57 = vsel %vm591_vm1, %v916_v49, %v588_v55 }
 0x929   :  { %v597_v59 = vsel %vm594_vm2, %v596_v56, %v592_v57 }
 0x92a   :  { %v599_v60 = vsel %vm1247_vm14, %v918_v58, %v597_v59 }
 0x92b   :  { %600 = vrot.lane.b32.xlu1 %v599_v60, %s1093_s20  ;;  %v603_v0 = vmul.f32 %v599_v60, %v554_v36 }
 0x99d   :  { %v601_v61 = vpop.permute.xlu1 %600 }
 0x99e   :  { %v602_v62 = vmul.f32 %v601_v61, %v599_v60 }
 0x9a0   :  { %604 = vrot.lane.b32.xlu2 %v602_v62, %s1090_s17 }
 0x9fa   :  { %v605_v1 = vpop.permute.xlu2 %604 }
 0x9fb   :  { %v606_v2 = vadd.f32 %v605_v1, %v603_v0 }
 0x9fd   :  { %919 = vtanh.f32 %v606_v2 }
 0xa03   :  { %v920_v3 = vpop.eup %919 }
 0xa04   :  { %608 = vrot.lane.b32.xlu0 %v920_v3, %s1093_s20 }
 0xa76   :  { %v609_v4 = vpop.permute.xlu0 %608 }
 0xa77   :  { %v610_v5 = vmul.f32 %v609_v4, %v599_v60 }
 0xa79   :  { %612 = vst [vmem:[#allocation13 + $0x8] sm:$0x3] %v610_v5  ;;  %v613_v6 = vmul.f32 %v610_v5, %v1241_v34  ;;  %v733_v5 = vld [vmem:[#allocation2 + $0xe] sm:$0x3] }
 0xa7b   :  { %v614_v7 = vpack.c.bf16 %v613_v6, %v613_v6 }
 0xa7d   :  { %623 = vmatmul.bf16.vlgmr.msrb.gmra.mxu2 %v614_v7 }
 0xb00   :  { %v624_v8 = vpop.f32.mrf.mxu2 }
 0xb01   :  { %v630_v10 = vadd.f32 %v629_v9, %v624_v8 }
 0xb03   :  { %v838_v11 = vmul.f32 -1.442695, %v630_v10 }
 0xb05   :  { %921 = vpow2.f32 %v838_v11 }
 0xb08   :  { %v626_v12 = vpop.f32.mrf.mxu2 }
 0xb0b   :  { %v922_v13 = vpop.eup %921 }
 0xb0c   :  { %v635_v14 = vadd.f32 1.0, %v922_v13 }
 0xb0e   :  { %923 = vrcp.f32 %v635_v14  ;;  %v647_v18 = vand.u32 2147483648, %v635_v14  ;;  %v645_v20 = vand.u32 2147483647, %v635_v14  ;;  %vm641_vm4 = vweird.f32 %v635_v14 }
 0xb0f   :  { %925 = vtanh.f32 %v630_v10 }
 0xb10   :  { %v648_v22 = vor.u32 1.1754944e-38, %v647_v18  ;;  %vm646_vm6 = vcmp.eq.f32.partialorder %v645_v20, 8.507059e+37 }
 0xb14   :  { %v924_v15 = vpop.eup %923 }
 0xb15   :  { %v637_v16 = vmul.f32 %v924_v15, %v635_v14  ;;  %vm642_vm3 = vweird.f32 %v924_v15  ;;  %v926_v24 = vpop.eup %925 }
 0xb16   :  { %vm643_vm5 = vmor %vm641_vm4, %vm642_vm3 }
 0xb17   :  { %v638_v17 = vsub.f32 1.0, %v637_v16 }
 0xb19   :  { %v639_v19 = vmul.f32 %v924_v15, %v638_v17 }
 0xb1b   :  { %v640_v21 = vadd.f32 %v924_v15, %v639_v19 }
 0xb1d   :  { %v644_v23 = vsel %vm643_vm5, %v924_v15, %v640_v21 }
 0xb1e   :  { %v649_v25 = vsel %vm646_vm6, %v648_v22, %v644_v23 }
 0xb1f   :  { %v651_v26 = vsel %vm1247_vm14, %v926_v24, %v649_v25 }
 0xb20   :  { %652 = vrot.lane.b32.xlu1 %v651_v26, %s1093_s20  ;;  %v655_v29 = vmul.f32 %v651_v26, %v606_v2 }
 0xb92   :  { %v653_v27 = vpop.permute.xlu1 %652 }
 0xb93   :  { %v654_v28 = vmul.f32 %v653_v27, %v651_v26 }
 0xb95   :  { %656 = vrot.lane.b32.xlu2 %v654_v28, %s1090_s17 }
 0xbef   :  { %v657_v30 = vpop.permute.xlu2 %656 }
 0xbf0   :  { %v658_v31 = vadd.f32 %v657_v30, %v655_v29 }
 0xbf2   :  { %927 = vtanh.f32 %v658_v31 }
 0xbf8   :  { %v928_v33 = vpop.eup %927 }
 0xbf9   :  { %660 = vrot.lane.b32.xlu0 %v928_v33, %s1093_s20 }
 0xc6b   :  { %v661_v32 = vpop.permute.xlu0 %660 }
 0xc6c   :  { %v662_v35 = vmul.f32 %v661_v32, %v651_v26 }
 0xc6e   :  { %664 = vst [vmem:[#allocation13 + $0xa] sm:$0x3] %v662_v35  ;;  %v665_v36 = vmul.f32 %v662_v35, %v1241_v34 }
 0xc70   :  { %v666_v37 = vpack.c.bf16 %v665_v36, %v665_v36 }
 0xc72   :  { %675 = vmatmul.bf16.vlgmr.msrb.gmra.mxu3 %v666_v37 }
 0xcf5   :  { %v676_v38 = vpop.f32.mrf.mxu3 }
 0xcf6   :  { %v682_v40 = vadd.f32 %v681_v39, %v676_v38 }
 0xcf8   :  { %v839_v41 = vmul.f32 -1.442695, %v682_v40 }
 0xcfa   :  { %929 = vpow2.f32 %v839_v41 }
 0xcfd   :  { %v678_v42 = vpop.f32.mrf.mxu3 }
 0xd00   :  { %v930_v43 = vpop.eup %929 }
 0xd01   :  { %v687_v44 = vadd.f32 1.0, %v930_v43 }
 0xd03   :  { %931 = vrcp.f32 %v687_v44  ;;  %v699_v48 = vand.u32 2147483648, %v687_v44  ;;  %v697_v50 = vand.u32 2147483647, %v687_v44  ;;  %vm693_vm8 = vweird.f32 %v687_v44 }
 0xd04   :  { %933 = vtanh.f32 %v682_v40 }
 0xd05   :  { %v700_v52 = vor.u32 1.1754944e-38, %v699_v48  ;;  %vm698_vm10 = vcmp.eq.f32.partialorder %v697_v50, 8.507059e+37 }
 0xd09   :  { %v932_v45 = vpop.eup %931 }
 0xd0a   :  { %v689_v46 = vmul.f32 %v932_v45, %v687_v44  ;;  %vm694_vm7 = vweird.f32 %v932_v45  ;;  %v934_v54 = vpop.eup %933 }
 0xd0b   :  { %vm695_vm9 = vmor %vm693_vm8, %vm694_vm7 }
 0xd0c   :  { %v690_v47 = vsub.f32 1.0, %v689_v46 }
 0xd0e   :  { %v691_v49 = vmul.f32 %v932_v45, %v690_v47 }
 0xd10   :  { %v692_v51 = vadd.f32 %v932_v45, %v691_v49 }
 0xd12   :  { %v696_v53 = vsel %vm695_vm9, %v932_v45, %v692_v51 }
 0xd13   :  { %v701_v55 = vsel %vm698_vm10, %v700_v52, %v696_v53 }
 0xd14   :  { %v703_v56 = vsel %vm1247_vm14, %v934_v54, %v701_v55 }
 0xd15   :  { %704 = vrot.lane.b32.xlu1 %v703_v56, %s1093_s20  ;;  %v707_v59 = vmul.f32 %v703_v56, %v658_v31 }
 0xd87   :  { %v705_v57 = vpop.permute.xlu1 %704 }
 0xd88   :  { %v706_v58 = vmul.f32 %v705_v57, %v703_v56 }
 0xd8a   :  { %708 = vrot.lane.b32.xlu2 %v706_v58, %s1090_s17 }
 0xde4   :  { %v709_v60 = vpop.permute.xlu2 %708 }
 0xde5   :  { %v710_v61 = vadd.f32 %v709_v60, %v707_v59 }
 0xde7   :  { %935 = vtanh.f32 %v710_v61 }
 0xded   :  { %v936_v62 = vpop.eup %935 }
 0xdee   :  { %712 = vrot.lane.b32.xlu0 %v936_v62, %s1093_s20 }
 0xe60   :  { %v713_v0 = vpop.permute.xlu0 %712 }
 0xe61   :  { %v714_v1 = vmul.f32 %v713_v0, %v703_v56 }
 0xe63   :  { %716 = vst [vmem:[#allocation13 + $0xc] sm:$0x3] %v714_v1  ;;  %v717_v2 = vmul.f32 %v714_v1, %v1241_v34 }
 0xe65   :  { %v718_v3 = vpack.c.bf16 %v717_v2, %v717_v2 }
 0xe67   :  { %727 = vmatmul.bf16.vlgmr.msra.gmra.mxu0 %v718_v3 }
 0xee4   :  { %v728_v4 = vpop.f32.mrf.mxu0 }
 0xee5   :  { %v734_v6 = vadd.f32 %v733_v5, %v728_v4 }
 0xee7   :  { %v840_v7 = vmul.f32 -1.442695, %v734_v6 }
 0xee9   :  { %937 = vpow2.f32 %v840_v7 }
 0xeec   :  { %v730_v8 = vpop.f32.mrf.mxu0 }
 0xeef   :  { %v938_v9 = vpop.eup %937 }
 0xef0   :  { %v739_v10 = vadd.f32 1.0, %v938_v9 }
 0xef2   :  { %939 = vrcp.f32 %v739_v10  ;;  %v751_v14 = vand.u32 2147483648, %v739_v10  ;;  %v749_v16 = vand.u32 2147483647, %v739_v10  ;;  %vm745_vm12 = vweird.f32 %v739_v10 }
 0xef3   :  { %941 = vtanh.f32 %v734_v6 }
 0xef4   :  { %v752_v17 = vor.u32 1.1754944e-38, %v751_v14  ;;  %vm750_vm15 = vcmp.eq.f32.partialorder %v749_v16, 8.507059e+37 }
 0xef8   :  { %v940_v11 = vpop.eup %939 }
 0xef9   :  { %v741_v12 = vmul.f32 %v940_v11, %v739_v10  ;;  %vm746_vm11 = vweird.f32 %v940_v11  ;;  %v942_v19 = vpop.eup %941 }
 0xefa   :  { %vm747_vm13 = vmor %vm745_vm12, %vm746_vm11 }
 0xefb   :  { %v742_v13 = vsub.f32 1.0, %v741_v12 }
 0xefd   :  { %v743_v15 = vmul.f32 %v940_v11, %v742_v13 }
 0xeff   :  { %v744_v34 = vadd.f32 %v940_v11, %v743_v15 }
 0xf01   :  { %v748_v18 = vsel %vm747_vm13, %v940_v11, %v744_v34 }
 0xf02   :  { %v753_v20 = vsel %vm750_vm15, %v752_v17, %v748_v18 }
 0xf03   :  { %v755_v21 = vsel %vm1247_vm14, %v942_v19, %v753_v20 }
 0xf04   :  { %756 = vrot.lane.b32.xlu1 %v755_v21, %s1093_s20  ;;  %v759_v24 = vmul.f32 %v755_v21, %v710_v61 }
 0xf76   :  { %v757_v22 = vpop.permute.xlu1 %756 }
 0xf77   :  { %v758_v23 = vmul.f32 %v757_v22, %v755_v21 }
 0xf79   :  { %760 = vrot.lane.b32.xlu2 %v758_v23, %s1090_s17 }
 0xfd3   :  { %v761_v25 = vpop.permute.xlu2 %760 }
 0xfd4   :  { %v762_v26 = vadd.f32 %v761_v25, %v759_v24 }
 0xfd6   :  { %943 = vtanh.f32 %v762_v26 }
 0xfdc   :  { %v944_v27 = vpop.eup %943 }
 0xfdd   :  { %764 = vrot.lane.b32.xlu0 %v944_v27, %s1093_s20 }
0x104f   :  { %v765_v63 = vpop.permute.xlu0 %764 }
0x1050   :  { %v766_v28 = vmul.f32 %v765_v63, %v755_v21 }
0x1052   :  { %768 = vst [vmem:[#allocation13 + $0xe] sm:$0x3] %v766_v28 }
0x1053   :  { %781 = dma.vmem_to_hbm [thread:$0]  %s774_s9, 256, %s776_s12, [#allocation5], %s1090_s17, %s1090_s17, %s1091_s18  }
0x1054   :  { %1085 = dma.done.wait [#allocation5], 256  }
0x1055   :  { %1086 = vsyncadd [#allocation5], 4294967040 }
0x1056   :  { %786 = vsyncpa [#allocation4], 1 }
0x1057   :  { %787 = vsyncpa [#allocation9], 1 }
0x1058   :  { %788 = vsyncpa [#allocation12], 1 }
0x1059   :  { %789 = vsyncpa [#allocation5], 1 }
0x105a   :  { %790 = vsyncpa [#allocation6], 1 }

</bundles_post_ra>
